<compile_context>
chip_gen: v7x
topology: tpu7x:2x2x1
jax: 0.10.0
libtpu: 0.0.40
codegen_flags: <defaults>
</compile_context>

<pallas_src>
import functools

import jax
import jax.numpy as jnp
from jax import lax
from jax.experimental import pallas as pl
from jax.experimental.pallas import tpu as pltpu

EPS = 1e-5
VMEM_LIMIT_BYTES = 64 * 1024 * 1024
# Set to jnp.bfloat16 on v6e/v7x for 2x MXU throughput (loosens tolerance vs f32 ref).
MATMUL_DTYPE = jnp.float32


# ---------------------------------------------------------------------------
# Fused kernel: [optional 2x2 max-pool] -> [optional prev-layer BN+ReLU]
#               -> Conv3x3 (single im2col matmul, no bias)
#               -> per-tile channel sum / sum-of-squares for two-pass BN.
# Grid: one batch element per step ("parallel").
# ---------------------------------------------------------------------------
def _conv_stats_kernel(*refs, pool_input, apply_prev_bn):
    if apply_prev_bn:
        x_ref, w_ref, scale_ref, shift_ref = refs[:4]
    else:
        x_ref, w_ref = refs[:2]
        scale_ref = shift_ref = None
    y_ref, sum_ref, ssq_ref = refs[-3:]

    x = x_ref[0].astype(jnp.float32)                         # (Hin, Win, Cin)

    if apply_prev_bn:
        # Previous layer's folded BN + ReLU, fused into this consumer.
        x = jnp.maximum(x * scale_ref[0] + shift_ref[0], 0.0)

    if pool_input:
        # MaxPool2d(2) fused in (no separate pooled activation in HBM).
        H, W, C = x.shape
        r = jnp.max(x.reshape(H // 2, 2, W, C), axis=1)       # row pairs (untiled axis)
        x = jnp.max(r.reshape(H // 2, W // 2, 2, C), axis=2)  # col pairs
        # TODO(synk): replace the W-splitting reshape above with sublane-strided
        # even/odd maximum to avoid the cross-sublane relayout on large images.

    Hh, Wh, Cin = x.shape
    Cout = y_ref.shape[-1]

    # 1-pixel zero halo built in VMEM (no HBM-side jnp.pad).
    zc = jnp.zeros((Hh, 1, Cin), jnp.float32)
    zr = jnp.zeros((1, Wh + 2, Cin), jnp.float32)
    xp = jnp.concatenate([zr, jnp.concatenate([zc, x, zc], axis=1), zr], axis=0)

    # im2col: hoist the (sublane) W shifts -- only 2 unaligned slices total;
    # the per-ki shifts are slices along the untiled H axis (cheap).
    xw = [xp[:, kj:kj + Wh, :] for kj in range(3)]            # (Hh+2, Wh, Cin) x3
    cols = [xw[kj][ki:ki + Hh] for ki in range(3) for kj in range(3)]
    patches = jnp.concatenate(cols, axis=-1).reshape(Hh * Wh, 9 * Cin)

    # Single MXU matmul, K = 9*Cin.  Conv bias omitted: training-mode BN's
    # mean subtraction cancels any per-channel constant exactly.
    y = jnp.dot(patches.astype(MATMUL_DTYPE), w_ref[...].astype(MATMUL_DTYPE),
                preferred_element_type=jnp.float32)           # (Hh*Wh, Cout)

    y_ref[0] = y.reshape(Hh, Wh, Cout).astype(y_ref.dtype)
    sum_ref[0] = jnp.sum(y, axis=0, keepdims=True)            # (1, Cout)
    ssq_ref[0] = jnp.sum(y * y, axis=0, keepdims=True)        # (1, Cout)


def conv3x3_stats(x, w_mat, prev_scale=None, prev_shift=None, *, pool_input):
    N, Hin, Win, Cin = x.shape
    Cout = w_mat.shape[-1]
    Hh, Wh = (Hin // 2, Win // 2) if pool_input else (Hin, Win)
    apply_prev = prev_scale is not None

    kernel = functools.partial(_conv_stats_kernel,
                               pool_input=pool_input,
                               apply_prev_bn=apply_prev)

    in_specs = [pl.BlockSpec((1, Hin, Win, Cin), lambda n: (n, 0, 0, 0)),
                pl.BlockSpec(w_mat.shape, lambda n: (0, 0))]
    inputs = [x, w_mat]
    if apply_prev:
        in_specs += [pl.BlockSpec((1, Cin), lambda n: (0, 0)),
                     pl.BlockSpec((1, Cin), lambda n: (0, 0))]
        inputs += [prev_scale, prev_shift]

    out_shape = (jax.ShapeDtypeStruct((N, Hh, Wh, Cout), x.dtype),
                 jax.ShapeDtypeStruct((N, 1, Cout), jnp.float32),
                 jax.ShapeDtypeStruct((N, 1, Cout), jnp.float32))
    out_specs = (pl.BlockSpec((1, Hh, Wh, Cout), lambda n: (n, 0, 0, 0)),
                 pl.BlockSpec((1, 1, Cout), lambda n: (n, 0, 0)),
                 pl.BlockSpec((1, 1, Cout), lambda n: (n, 0, 0)))

    return pl.pallas_call(
        kernel,
        out_shape=out_shape,
        grid=(N,),
        in_specs=in_specs,
        out_specs=out_specs,
        compiler_params=pltpu.CompilerParams(
            dimension_semantics=("parallel",),
            vmem_limit_bytes=VMEM_LIMIT_BYTES),
    )(*inputs)


# ---------------------------------------------------------------------------
# Epilogue kernel: folded BN (scale/shift) + ReLU for the last conv layer.
# ---------------------------------------------------------------------------
def _bn_relu_kernel(y_ref, scale_ref, shift_ref, o_ref):
    y = y_ref[0].astype(jnp.float32)
    o_ref[0] = jnp.maximum(y * scale_ref[0] + shift_ref[0], 0.0).astype(o_ref.dtype)


def bn_relu_apply(y, scale, shift):
    N, Hh, Wh, Cout = y.shape
    return pl.pallas_call(
        _bn_relu_kernel,
        out_shape=jax.ShapeDtypeStruct((N, Hh, Wh, Cout), y.dtype),
        grid=(N,),
        in_specs=[pl.BlockSpec((1, Hh, Wh, Cout), lambda n: (n, 0, 0, 0)),
                  pl.BlockSpec((1, Cout), lambda n: (0, 0)),
                  pl.BlockSpec((1, Cout), lambda n: (0, 0))],
        out_specs=pl.BlockSpec((1, Hh, Wh, Cout), lambda n: (n, 0, 0, 0)),
        compiler_params=pltpu.CompilerParams(
            dimension_semantics=("parallel",),
            vmem_limit_bytes=VMEM_LIMIT_BYTES),
    )(y, scale, shift)


# ---------------------------------------------------------------------------
# Per-channel fold of the two-pass BN statistics (tiny (Cout,)-sized math).
# ---------------------------------------------------------------------------
def _fold_bn(sums, ssqs, count, gamma, beta, eps):
    total = jnp.sum(sums, axis=0)                 # (1, Cout)
    total_sq = jnp.sum(ssqs, axis=0)              # (1, Cout)
    mean = total / count
    var = total_sq / count - mean * mean          # biased batch variance
    inv_std = lax.rsqrt(var + eps)
    scale = gamma * inv_std
    shift = beta - mean * scale
    return scale, shift


# ---------------------------------------------------------------------------
# DownBlock wrapper (NCHW in / NCHW out, like PyTorch).
# ---------------------------------------------------------------------------
def down_block_forward(x_nchw, params, eps=EPS):
    x = jnp.transpose(x_nchw, (0, 2, 3, 1))       # -> NHWC
    N = x.shape[0]

    y = x
    scale = shift = None
    first = True
    for (w, _b, gamma, beta) in params:           # conv bias _b cancelled by BN
        cin, cout = w.shape[2], w.shape[3]
        w_mat = w.reshape(9 * cin, cout)          # im2col weight layout
        y, sums, ssqs = conv3x3_stats(y, w_mat, scale, shift, pool_input=first)
        count = N * y.shape[1] * y.shape[2]
        scale, shift = _fold_bn(sums, ssqs, count, gamma, beta, eps)
        first = False

    out = bn_relu_apply(y, scale, shift)
    return jnp.transpose(out, (0, 3, 1, 2))       # -> NCHW


def init_params(key, in_channels, out_channels, nb_conv):
    params = []
    cin = in_channels
    for _ in range(nb_conv):
        key, k1, k2, k3, k4 = jax.random.split(key, 5)
        w = 0.1 * jax.random.normal(k1, (3, 3, cin, out_channels), jnp.float32)
        b = 0.1 * jax.random.normal(k2, (1, out_channels), jnp.float32)
        gamma = 1.0 + 0.1 * jax.random.normal(k3, (1, out_channels), jnp.float32)
        beta = 0.1 * jax.random.normal(k4, (1, out_channels), jnp.float32)
        params.append((w, b, gamma, beta))
        cin = out_channels
    return params


# ---------------------------------------------------------------------------
# Pure-JAX reference (models the PyTorch block exactly, including conv bias).
# ---------------------------------------------------------------------------
def ref_down_block(x_nchw, params, eps=EPS):
    x = jnp.transpose(x_nchw, (0, 2, 3, 1))
    x = lax.reduce_window(x, -jnp.inf, lax.max,
                          (1, 2, 2, 1), (1, 2, 2, 1), "VALID")
    for w, b, gamma, beta in params:
        y = lax.conv_general_dilated(x, w, (1, 1), "SAME",
                                     dimension_numbers=("NHWC", "HWIO", "NHWC"))
        y = y + b.reshape(1, 1, 1, -1)
        mean = jnp.mean(y, axis=(0, 1, 2), keepdims=True)
        var = jnp.mean((y - mean) ** 2, axis=(0, 1, 2), keepdims=True)
        norm = (y - mean) / jnp.sqrt(var + eps)
        x = jnp.maximum(gamma.reshape(1, 1, 1, -1) * norm
                        + beta.reshape(1, 1, 1, -1), 0.0)
    return jnp.transpose(x, (0, 3, 1, 2))


if __name__ == "__main__":
    # Small block consistent with the module: batch=2, in_ch=4, 16x16 spatial,
    # out_ch=8, two Conv-BN-ReLU layers after the 2x2 max-pool.
    N, Cin, Hs, Ws = 2, 4, 16, 16
    Cout, nb_conv = 8, 2

    x = jax.random.normal(jax.random.PRNGKey(0), (N, Cin, Hs, Ws), dtype=jnp.float32)
    params = init_params(jax.random.PRNGKey(42), Cin, Cout, nb_conv)

    out = down_block_forward(x, params)
    out = jax.block_until_ready(out)
    assert out.shape == (N, Cout, Hs // 2, Ws // 2), out.shape

    ref = ref_down_block(x, params)
    if not jnp.allclose(out, ref, atol=1e-4, rtol=1e-4):
        raise AssertionError("Pallas DownBlock output mismatch vs JAX reference")

    print("KERNEL_OK")
</pallas_src>

<mosaic_0001>
module attributes {stable_mosaic.version = 11 : i64} {
  func.func @_conv_stats_kernel(%arg0: i32, %arg1: memref<1x16x16x4xf32, #tpu.memory_space<vmem>>, %arg2: memref<36x8xf32, #tpu.memory_space<vmem>>, %arg3: memref<1x8x8x8xf32, #tpu.memory_space<vmem>>, %arg4: memref<1x1x8xf32, #tpu.memory_space<vmem>>, %arg5: memref<1x1x8xf32, #tpu.memory_space<vmem>>) attributes {dimension_semantics = [#tpu.dimension_semantics<parallel>], iteration_bounds = array<i64: 2>, scalar_prefetch = 0 : i64, scratch_operands = 0 : i64, tpu.core_type = #tpu.core_type<tc>, window_params = [{transform_indices = @transform_0, window_bounds = array<i64: 1, 16, 16, 4>}, {pipeline_mode = #tpu.pipeline_mode<synchronous>, transform_indices = @transform_1, window_bounds = array<i64: 36, 8>}, {transform_indices = @transform_2, window_bounds = array<i64: 1, 8, 8, 8>}, {transform_indices = @transform_3, window_bounds = array<i64: 1, 1, 8>}, {transform_indices = @transform_4, window_bounds = array<i64: 1, 1, 8>}]} {
    %c0 = arith.constant 0 : index
    %c0_0 = arith.constant 0 : index
    %c0_1 = arith.constant 0 : index
    %c0_2 = arith.constant 0 : index
    %0 = vector.load %arg1[%c0, %c0_0, %c0_1, %c0_2] : memref<1x16x16x4xf32, #tpu.memory_space<vmem>>, vector<1x16x16x4xf32>
    %1 = vector.shape_cast %0 : vector<1x16x16x4xf32> to vector<16x16x4xf32>
    %2 = vector.shape_cast %1 : vector<16x16x4xf32> to vector<8x2x16x4xf32>
    %cst = arith.constant dense<0xFF800000> : vector<8x16x4xf32>
    %3 = vector.multi_reduction <maximumf>, %2, %cst [1] : vector<8x2x16x4xf32> to vector<8x16x4xf32>
    %4 = vector.shape_cast %3 : vector<8x16x4xf32> to vector<8x8x2x4xf32>
    %cst_3 = arith.constant dense<0xFF800000> : vector<8x8x4xf32>
    %5 = vector.multi_reduction <maximumf>, %4, %cst_3 [2] : vector<8x8x2x4xf32> to vector<8x8x4xf32>
    %cst_4 = arith.constant 0.000000e+00 : f32
    %6 = vector.broadcast %cst_4 : f32 to vector<8x1x4xf32>
    %cst_5 = arith.constant 0.000000e+00 : f32
    %7 = vector.broadcast %cst_5 : f32 to vector<1x10x4xf32>
    %8 = tpu.concatenate %6, %5, %6 in 1 : vector<8x1x4xf32>, vector<8x8x4xf32>, vector<8x1x4xf32> -> vector<8x10x4xf32>
    %9 = tpu.concatenate %7, %8, %7 in 0 : vector<1x10x4xf32>, vector<8x10x4xf32>, vector<1x10x4xf32> -> vector<10x10x4xf32>
    %10 = vector.extract_strided_slice %9 {offsets = [0, 0, 0], sizes = [10, 8, 4], strides = [1, 1, 1]} : vector<10x10x4xf32> to vector<10x8x4xf32>
    %11 = vector.extract_strided_slice %9 {offsets = [0, 1, 0], sizes = [10, 8, 4], strides = [1, 1, 1]} : vector<10x10x4xf32> to vector<10x8x4xf32>
    %12 = vector.extract_strided_slice %9 {offsets = [0, 2, 0], sizes = [10, 8, 4], strides = [1, 1, 1]} : vector<10x10x4xf32> to vector<10x8x4xf32>
    %13 = vector.extract_strided_slice %10 {offsets = [0, 0, 0], sizes = [8, 8, 4], strides = [1, 1, 1]} : vector<10x8x4xf32> to vector<8x8x4xf32>
    %14 = vector.extract_strided_slice %11 {offsets = [0, 0, 0], sizes = [8, 8, 4], strides = [1, 1, 1]} : vector<10x8x4xf32> to vector<8x8x4xf32>
    %15 = vector.extract_strided_slice %12 {offsets = [0, 0, 0], sizes = [8, 8, 4], strides = [1, 1, 1]} : vector<10x8x4xf32> to vector<8x8x4xf32>
    %16 = vector.extract_strided_slice %10 {offsets = [1, 0, 0], sizes = [8, 8, 4], strides = [1, 1, 1]} : vector<10x8x4xf32> to vector<8x8x4xf32>
    %17 = vector.extract_strided_slice %11 {offsets = [1, 0, 0], sizes = [8, 8, 4], strides = [1, 1, 1]} : vector<10x8x4xf32> to vector<8x8x4xf32>
    %18 = vector.extract_strided_slice %12 {offsets = [1, 0, 0], sizes = [8, 8, 4], strides = [1, 1, 1]} : vector<10x8x4xf32> to vector<8x8x4xf32>
    %19 = vector.extract_strided_slice %10 {offsets = [2, 0, 0], sizes = [8, 8, 4], strides = [1, 1, 1]} : vector<10x8x4xf32> to vector<8x8x4xf32>
    %20 = vector.extract_strided_slice %11 {offsets = [2, 0, 0], sizes = [8, 8, 4], strides = [1, 1, 1]} : vector<10x8x4xf32> to vector<8x8x4xf32>
    %21 = vector.extract_strided_slice %12 {offsets = [2, 0, 0], sizes = [8, 8, 4], strides = [1, 1, 1]} : vector<10x8x4xf32> to vector<8x8x4xf32>
    %22 = tpu.concatenate %13, %14, %15, %16, %17, %18, %19, %20, %21 in 2 : vector<8x8x4xf32>, vector<8x8x4xf32>, vector<8x8x4xf32>, vector<8x8x4xf32>, vector<8x8x4xf32>, vector<8x8x4xf32>, vector<8x8x4xf32>, vector<8x8x4xf32>, vector<8x8x4xf32> -> vector<8x8x36xf32>
    %23 = vector.shape_cast %22 : vector<8x8x36xf32> to vector<64x36xf32>
    %c0_6 = arith.constant 0 : index
    %c0_7 = arith.constant 0 : index
    %24 = vector.load %arg2[%c0_6, %c0_7] : memref<36x8xf32, #tpu.memory_space<vmem>>, vector<36x8xf32>
    %cst_8 = arith.constant dense<0.000000e+00> : vector<64x8xf32>
    %25 = tpu.matmul %23, %24, %cst_8 {dimension_numbers = #tpu.dot_dimension_numbers<[1], [0], [0], [1], [0, 0, 1, 1], [], []>} : vector<64x36xf32>, vector<36x8xf32>, vector<64x8xf32> -> vector<64x8xf32>
    %26 = vector.shape_cast %25 : vector<64x8xf32> to vector<8x8x8xf32>
    %c0_9 = arith.constant 0 : index
    %c0_10 = arith.constant 0 : index
    %c0_11 = arith.constant 0 : index
    %c0_12 = arith.constant 0 : index
    %27 = vector.load %arg3[%c0_9, %c0_10, %c0_11, %c0_12] : memref<1x8x8x8xf32, #tpu.memory_space<vmem>>, vector<1x8x8x8xf32>
    %28 = vector.shape_cast %27 : vector<1x8x8x8xf32> to vector<8x8x8xf32>
    %29 = vector.shape_cast %26 : vector<8x8x8xf32> to vector<1x8x8x8xf32>
    tpu.vector_store %arg3[%c0_9, %c0_10, %c0_11, %c0_12], %29 {strides = array<i32>} : memref<1x8x8x8xf32, #tpu.memory_space<vmem>>, vector<1x8x8x8xf32>,
    %cst_13 = arith.constant dense<0.000000e+00> : vector<8xf32>
    %30 = vector.multi_reduction <add>, %25, %cst_13 [0] : vector<64x8xf32> to vector<8xf32>
    %31 = vector.shape_cast %30 : vector<8xf32> to vector<1x8xf32>
    %c0_14 = arith.constant 0 : index
    %c0_15 = arith.constant 0 : index
    %c0_16 = arith.constant 0 : index
    %32 = vector.load %arg4[%c0_14, %c0_15, %c0_16] : memref<1x1x8xf32, #tpu.memory_space<vmem>>, vector<1x1x8xf32>
    %33 = vector.shape_cast %32 : vector<1x1x8xf32> to vector<1x8xf32>
    %34 = vector.shape_cast %31 : vector<1x8xf32> to vector<1x1x8xf32>
    tpu.vector_store %arg4[%c0_14, %c0_15, %c0_16], %34 {strides = array<i32>} : memref<1x1x8xf32, #tpu.memory_space<vmem>>, vector<1x1x8xf32>,
    %35 = arith.mulf %25, %25 : vector<64x8xf32>
    %cst_17 = arith.constant dense<0.000000e+00> : vector<8xf32>
    %36 = vector.multi_reduction <add>, %35, %cst_17 [0] : vector<64x8xf32> to vector<8xf32>
    %37 = vector.shape_cast %36 : vector<8xf32> to vector<1x8xf32>
    %c0_18 = arith.constant 0 : index
    %c0_19 = arith.constant 0 : index
    %c0_20 = arith.constant 0 : index
    %38 = vector.load %arg5[%c0_18, %c0_19, %c0_20] : memref<1x1x8xf32, #tpu.memory_space<vmem>>, vector<1x1x8xf32>
    %39 = vector.shape_cast %38 : vector<1x1x8xf32> to vector<1x8xf32>
    %40 = vector.shape_cast %37 : vector<1x8xf32> to vector<1x1x8xf32>
    tpu.vector_store %arg5[%c0_18, %c0_19, %c0_20], %40 {strides = array<i32>} : memref<1x1x8xf32, #tpu.memory_space<vmem>>, vector<1x1x8xf32>,
    return
  }
  func.func @transform_0(%arg0: i32) -> (i32, i32, i32, i32) {
    %c0_i32 = arith.constant 0 : i32
    %c0_i32_0 = arith.constant 0 : i32
    %c0_i32_1 = arith.constant 0 : i32
    %c0_i32_2 = arith.constant 0 : i32
    return %arg0, %c0_i32, %c0_i32_0, %c0_i32_1 : i32, i32, i32, i32
  }
  func.func @transform_1(%arg0: i32) -> (i32, i32) {
    %c0_i32 = arith.constant 0 : i32
    %c0_i32_0 = arith.constant 0 : i32
    %c0_i32_1 = arith.constant 0 : i32
    return %c0_i32, %c0_i32_0 : i32, i32
  }
  func.func @transform_2(%arg0: i32) -> (i32, i32, i32, i32) {
    %c0_i32 = arith.constant 0 : i32
    %c0_i32_0 = arith.constant 0 : i32
    %c0_i32_1 = arith.constant 0 : i32
    %c0_i32_2 = arith.constant 0 : i32
    return %arg0, %c0_i32, %c0_i32_0, %c0_i32_1 : i32, i32, i32, i32
  }
  func.func @transform_3(%arg0: i32) -> (i32, i32, i32) {
    %c0_i32 = arith.constant 0 : i32
    %c0_i32_0 = arith.constant 0 : i32
    %c0_i32_1 = arith.constant 0 : i32
    return %arg0, %c0_i32, %c0_i32_0 : i32, i32, i32
  }
  func.func @transform_4(%arg0: i32) -> (i32, i32, i32) {
    %c0_i32 = arith.constant 0 : i32
    %c0_i32_0 = arith.constant 0 : i32
    %c0_i32_1 = arith.constant 0 : i32
    return %arg0, %c0_i32, %c0_i32_0 : i32, i32, i32
  }
}

</mosaic_0001>

<bundles_post_ra>
// kernel: tpu_custom_call.1
= control target key start
LH: loop header
LB: loop body
LE: loop exit
PB: predicated region body
PF: predicated region fallthrough
CT: control target
= control target key end

     0   :  { %10 = vsyncpa [#allocation3], 0  ;;  %s3266_s0 = inlined_call_operand.hbm [shape: f32[2,16,16,4], index: 0, kind: input, shape index: {}]   ;;  %s3267_s1 = inlined_call_operand.hbm [shape: f32[36,8], index: 1, kind: input, shape index: {}]   ;;  %s3268_s2 = inlined_call_operand.hbm [shape: f32[2,8,8,8], index: 2, kind: output, shape index: {0}]   ;;  %s3269_s3 = inlined_call_operand.hbm [shape: f32[2,1,8], index: 3, kind: output, shape index: {1}]   ;;  %s3270_s4 = inlined_call_operand.hbm [shape: f32[2,1,8], index: 4, kind: output, shape index: {2}]  }
   0x1   :  { %12 = vsyncpa [#allocation3 + $0x1], 0 }
   0x2   :  { %13 = vsyncpa [#allocation6], 0 }
   0x3   :  { %14 = vsyncpa [#allocation4], 0 }
   0x4   :  { %16 = vsyncpa [#allocation4 + $0x1], 0 }
   0x5   :  { %17 = vsyncpa [#allocation9], 0 }
   0x6   :  { %19 = vsyncpa [#allocation9 + $0x1], 0  ;;  %s2389_s15 = smov 0   ;;  %s2391_s16 = smov 0  }
   0x7   :  { %s2393_s17 = smov 0   ;;  %s2395_s18 = smov 0  }
   0x8 LB: > { %s2410_s19 = sadd.s32 4294967295, %s2344_s18   ;;  %s1998_s20 = sadd.s32 4294967294, %s2344_s18   ;;  %s2344_s18 = sphi %s2395_s18, %s3290_s18   ;;  %s2340_s17 = sphi %s2393_s17, %s3289_s17   ;;  %s2336_s16 = sphi %s2391_s16, %s3288_s16   ;;  %s2332_s15 = sphi %s2389_s15, %s3287_s15  }
   0x9   : > { %p45_p0 = scmp.ne.s32.totalorder %s2336_s16, %s2332_s15  ;;  %p3271_p1 = scmp.eq.s32.totalorder %s2410_s19, 0 }
   0xa   : > { %p96_p3 = scmp.eq.s32.totalorder %s1998_s20, 1  ;;  %p1999_p5 = scmp.ge.s32.totalorder %s2344_s18, 1 }
   0xb   : > { %p2421_p4 = por %p3271_p1, %p45_p0  ;;  %p155_p7 = scmp.lt.s32.totalorder %s2344_s18, 3 }
   0xc   : > { %p2426_p6 = por %p96_p3, %p45_p0  ;;  %s2346_s24 = smov [#allocation5]  }
   0xd   : > { %s3274_s21 = scalar_select %p2421_p4, 1, 0 }
   0xe   : > { %s3275_s22 = scalar_select %p2426_p6, 1, 0 }
   0xf   : > { %p2431_p8 = pnand %p1999_p5, %p155_p7  ;;  %s167_s25 = sshll.u32 %s2346_s24, 4  ;;  %s2435_s25 = int_to_ptr.vmem [resolvable:$true] %s167_s25 }
  0x10   : > { %s2447_s27 = sadd.s32 1, %s2344_s18   ;;  %s32_s28 = sadd.s32 1, %s2340_s17 }
  0x11   : > { %s3276_s23 = scalar_select %p2431_p8, 1, 0 }
  0x12   : > { %p2088_p9 = pneg %p2431_p8  ;;  %s29_s29 = ssub.s32 %s2344_s18, %s2447_s27 }
  0x13   : > { %s2156_s6 = scalar_lea.hbm %s3267_s1, 640 }
  0x14   : > { %p2442_p11 = pnand %p2088_p9, %p3271_p1  ;;  %p2157_p12 = scmp.ne.s32.totalorder %s3267_s1, %s2156_s6 }
  0x15   : > { %p2163_p5 = scmp.lt.u32.totalorder %s2156_s6, %s3267_s1 }
  0x16   : > { %p2158_p13 = pneg %p2442_p11 }
  0x18   : > { %p2159_p0 = pnand %p2158_p13, %p2157_p12 }
  0x1a   : > { %p2160_p3 = pneg %p2159_p0 }
  0x1c   : > { %p2165_p7 = pnand %p2163_p5, %p2160_p3 }
  0x1e   : > { %2168 = shalt.err (!%p2165_p7)
}
  0x1f   : > { %s2169_s11 = scalar_lea.vmem %s2435_s25, 640  ;;  %p2177_p2 = scmp.lt.s32.totalorder %s2435_s25, %s2435_s25 }
  0x20   : > { %p2170_p9 = scmp.ne.s32.totalorder %s2435_s25, %s2169_s11  ;;  %p2178_p6 = scmp.lt.s32.totalorder %s2169_s11, %s2169_s11 }
  0x22   : > { %p2172_p10 = pnand %p2170_p9, %p2158_p13  ;;  %p2179_p4 = por %p2178_p6, %p2177_p2 }
  0x24   : > { %p2173_p1 = pneg %p2172_p10 }
  0x26   : > { %p2180_p8 = pnand %p2179_p4, %p2173_p1 }
  0x28   : > { %2183 = shalt.err (!%p2180_p8)
}
  0x29   : > { %s2347_s12 = smov 128   ;;  %s2348_s13 = smov 8  }
  0x2a   : > { %2091 = dma.hbm_to_vmem [thread:$0]  (!%p2442_p11), %s3267_s1, 640, %s2435_s25, [#allocation6], %s2347_s12, %s2347_s12, %s2348_s13  }
  0x2b   : > { %p30_p1 = scmp.eq.s32.totalorder %s29_s29, 0  ;;  %p39_p2 = scmp.ne.s32.totalorder %s2340_s17, %s2336_s16 }
  0x2c   : > { %p40_p4 = scmp.eq.s32.totalorder %s2344_s18, 0  ;;  %p2107_p6 = scmp.lt.s32.totalorder %s2344_s18, 2 }
  0x2d   : > { %s2481_s30 = scalar_select %p30_p1, %s2340_s17, %s32_s28  }
  0x2e   : > { %p41_p8 = por %p40_p4, %p39_p2  ;;  %p3278_p10 = scmp.eq.s32.totalorder %s2410_s19, 1 }
  0x2f   : > { %s181_s26 = sand.u32 1, %s2340_s17   ;;  %s2025_s6 = sshll.u32 %s2344_s18, 12 }
  0x30   : > { %p2485_p12 = por %p3278_p10, %p39_p2  ;;  %s2002_s7 = sshll.u32 %s181_s26, 8 }
  0x31   : > { %s2494_s10 = scalar_lea.hbm %s3266_s0, %s2025_s6  ;;  %s185_s25 = scalar_lea.vmem [#allocation2], %s2002_s7 }
  0x32   : > { %s192_s28 = sshll.u32 %s185_s25, 4  ;;  %p2496_p11 = pnand %p2107_p6, %p41_p8  ;;  %s2500_s28 = int_to_ptr.vmem [resolvable:$true] %s192_s28 }
  0x33   : > { %s2502_s11 = scalar_lea.sflag [#allocation3], %s181_s26  ;;  %s2184_s14 = scalar_lea.hbm %s2494_s10, 4096 }
  0x34   : > { %p2185_p13 = scmp.ne.s32.totalorder %s2494_s10, %s2184_s14  ;;  %p2186_p0 = pneg %p2496_p11 }
  0x35   : > { %s2189_s7 = scalar_lea.hbm %s3266_s0, 8192  ;;  %p2190_p7 = scmp.lt.u32.totalorder %s2494_s10, %s3266_s0 }
  0x36   : > { %p2187_p3 = pnand %p2186_p0, %p2185_p13  ;;  %p2191_p9 = scmp.lt.u32.totalorder %s2189_s7, %s2184_s14 }
  0x37   : > { %p2193_p2 = scmp.lt.u32.totalorder %s2184_s14, %s2494_s10 }
  0x38   : > { %p2188_p5 = pneg %p2187_p3  ;;  %p2192_p1 = por %p2191_p9, %p2190_p7 }
  0x3a   : > { %p2194_p4 = por %p2193_p2, %p2192_p1 }
  0x3c   : > { %p2195_p6 = pnand %p2194_p4, %p2188_p5 }
  0x3e   : > { %2198 = shalt.err (!%p2195_p6)
}
  0x3f   : > { %s2199_s26 = scalar_lea.vmem %s2500_s28, 4096  ;;  %s2349_s25 = smov [#allocation2]  }
  0x40   : > { %p2200_p8 = scmp.ne.s32.totalorder %s2500_s28, %s2199_s26  ;;  %s2204_s24 = sshll.u32 %s2349_s25, 4  ;;  %s2205_s24 = int_to_ptr.vmem [resolvable:$false] %s2204_s24 }
  0x41   : > { %s2206_s6 = scalar_lea.vmem %s2205_s24, 8192  ;;  %p2207_p3 = scmp.lt.s32.totalorder %s2500_s28, %s2205_s24 }
  0x42   : > { %p2202_p10 = pnand %p2200_p8, %p2186_p0  ;;  %p2208_p7 = scmp.lt.s32.totalorder %s2206_s6, %s2199_s26 }
  0x44   : > { %p2203_p13 = pneg %p2202_p10  ;;  %p2209_p9 = por %p2208_p7, %p2207_p3 }
  0x46   : > { %p2210_p1 = pnand %p2209_p9, %p2203_p13 }
  0x48   : > { %2213 = shalt.err (!%p2210_p1)
}
  0x49   : > { %2095 = dma.hbm_to_vmem [thread:$0]  (!%p2496_p11), %s2494_s10, 4096, %s2500_s28, %s2502_s11, %s2347_s12, %s2347_s12, %s2348_s13  }
  0x4a   : > { %p3281_p0 = scmp.ne.s32.totalorder %s3276_s23, 0 }
  0x4b   : > { %s2536_s14 = sand.u32 (!%p3281_p0), 1, %s2336_s16   ;;  %p3282_p5 = scmp.ne.s32.totalorder (!%p3281_p0), %s3274_s21, 0 }
  0x4c   : > { %204 = sbr.rel (%p3281_p0) target bundleno = 685 (0x2ad), region = 28  ;;  %s2006_s7 = sshll.u32 (!%p3281_p0), %s2536_s14, 8 }
  0x4d   : > { %s207_s8 = scalar_lea.sflag (!%p3281_p0), [#allocation3], %s2536_s14  ;;  %s2540_s9 = scalar_lea.vmem (!%p3281_p0), [#allocation2], %s2006_s7 }
  0x53   : > { %2315 = dma.done.wait (%p3282_p5), %s207_s8, 4096  }
  0x54   : > { %2317 = vsyncadd (%p3282_p5), %s207_s8, 4294963200  ;;  %p3283_p11 = scmp.eq.s32.totalorder %s2410_s19, 0 }
  0x56   : > { %2319 = dma.done.wait (%p3283_p11), [#allocation6], 640   ;;  %p3284_p2 = pmov %p3283_p11 }
  0x57   : > { %v348_v0 = vlaneseq  ;;  %v2350_v1 = vmov 0.0   ;;  %v2351_v4 = vmov 1983009808   ;;  %s2352_s21 = smov 8   ;;  %s2353_s23 = smov 4   ;;  %vm279_vm0 = vcmask 31744  }
  0x58   : > { %2321 = vsyncadd (%p3284_p2), [#allocation6], 4294966656  ;;  %v2551_v2 = vrot.slane %v2350_v1, 2  ;;  %v2554_v3 = vrot.slane %v2350_v1, 1  ;;  %v346_v5 = vunpack.c.l.s4 %v2351_v4  ;;  %v251_v8 = vld [vmem:[%s2540_s9 + $0x20] sm:$0xff]  ;;  %v252_v9 = vld [vmem:[%s2540_s9 + $0x28] sm:$0xff] }
  0x59   : > { %v349_v6 = vshrl.u32 %v348_v0, 7  ;;  %v253_v10 = vld [vmem:[%s2540_s9 + $0x30] sm:$0xff]  ;;  %vm680_vm1 = vcmask 25600   ;;  %v254_v12 = vld [vmem:[%s2540_s9 + $0x38] sm:$0xff]  ;;  %v286_v13 = vsel %vm279_vm0, %v251_v8, -inf  ;;  %v289_v15 = vsel %vm279_vm0, %v252_v9, -inf }
  0x5a   : > { %1367 = vrot.lane.b32.xlu1 %v2551_v2, %s2352_s21  ;;  %1319 = vrot.lane.b32.xlu0 %v2554_v3, %s2353_s23  ;;  %v347_v7 = vunpack.c.0.s8 %v346_v5  ;;  %v287_v14 = vsel %vm279_vm0, %v253_v10, -inf  ;;  %v247_v16 = vld [vmem:[%s2540_s9] sm:$0xff]  ;;  %v248_v17 = vld [vmem:[%s2540_s9 + $0x8] sm:$0xff]  ;;  %v290_v19 = vsel %vm279_vm0, %v254_v12, -inf  ;;  %vm1193_vm2 = vcmask 1042434   ;;  %s2354_s12 = smov 12  }
  0x5b   : > { %v288_v18 = vmax.f32 %v286_v13, %v287_v14  ;;  %v249_v20 = vld [vmem:[%s2540_s9 + $0x10] sm:$0xff]  ;;  %v250_v21 = vld [vmem:[%s2540_s9 + $0x18] sm:$0xff]  ;;  %v280_v22 = vsel %vm279_vm0, %v247_v16, -inf  ;;  %v283_v23 = vsel %vm279_vm0, %v248_v17, -inf  ;;  %v255_v24 = vld [vmem:[%s2540_s9 + $0x40] sm:$0xff]  ;;  %v291_v25 = vmax.f32 %v289_v15, %v290_v19  ;;  %s2355_s13 = smov 24  }
  0x5c   : > { %v2563_v11 = vsub.s32 %v347_v7, %v349_v6  ;;  %v281_v26 = vsel %vm279_vm0, %v249_v20, -inf  ;;  %v284_v27 = vsel %vm279_vm0, %v250_v21, -inf  ;;  %v256_v28 = vld [vmem:[%s2540_s9 + $0x48] sm:$0xff]  ;;  %v257_v29 = vld [vmem:[%s2540_s9 + $0x50] sm:$0xff]  ;;  %v2582_v30 = vsel %vm279_vm0, %v255_v24, -inf  ;;  %s2356_s10 = smov 16  }
  0x5d   : > { %v378_v31 = vcombine.high %v288_v18, %v288_v18  ;;  %v282_v33 = vmax.f32 %v280_v22, %v281_v26  ;;  %v2585_v34 = vmax.f32 %v283_v23, %v284_v27  ;;  %v395_v35 = vcombine.high %v291_v25, %v291_v25  ;;  %s2357_s28 = smov 20   ;;  %s2358_s29 = smov 28  }
  0x5e   : > { %v385_v32 = vrot.slane %v288_v18, %v2563_v11  ;;  %v402_v36 = vrot.slane %v291_v25, %v2563_v11  ;;  %v2589_v37 = vsel %vm279_vm0, %v257_v29, -inf  ;;  %v2592_v38 = vsel %vm279_vm0, %v256_v28, -inf  ;;  %s2359_s11 = smov 32   ;;  %s2008_s26 = sshll.u32 %s2536_s14, 6 }
  0x5f   : > { %v392_v39 = vrot.slane %v378_v31, %v2563_v11  ;;  %v344_v42 = vcombine.high %v282_v33, %v282_v33  ;;  %v2597_v43 = vrot.slane %v395_v35, %v2563_v11  ;;  %vm1195_vm3 = vcmask 1043459   ;;  %s3108_s25 = scalar_lea.vmem [#allocation7], %s2008_s26  ;;  %s2026_s6 = sshll.u32 %s2410_s19, 10 }
  0x60   : > { %v393_v40 = vcombine.high %v385_v32, %v385_v32  ;;  %v737_v41 = vsel %vm680_vm1, %v385_v32, -inf  ;;  %v410_v44 = vcombine.high %v402_v36, %v402_v36  ;;  %v765_v46 = vsel %vm680_vm1, %v402_v36, -inf  ;;  %s1836_s24 = sshll.u32 %s3108_s25, 4  ;;  %s3136_s24 = int_to_ptr.vmem [resolvable:$true] %s1836_s24 }
  0x61   : > { %v738_v45 = vrot.slane %v737_v41, 4  ;;  %v394_v47 = vcombine.high %v392_v39, %v392_v39  ;;  %v751_v49 = vsel %vm680_vm1, %v392_v39, -inf  ;;  %v766_v50 = vrot.slane %v765_v46, 4 }
  0x62   : > { %v744_v48 = vsel %vm680_vm1, %v393_v40, -inf  ;;  %v752_v53 = vrot.slane %v751_v49, 4  ;;  %v772_v54 = vsel %vm680_vm1, %v410_v44, -inf  ;;  %v779_v58 = vsel %vm680_vm1, %v2597_v43, -inf }
  0x63   : > { %v739_v51 = vmax.f32 %v737_v41, %v738_v45  ;;  %v745_v52 = vrot.slane %v744_v48, 4  ;;  %v758_v55 = vsel %vm680_vm1, %v394_v47, -inf  ;;  %v767_v56 = vmax.f32 %v765_v46, %v766_v50 }
  0x64   : > { %v773_v57 = vrot.slane %v772_v54, 4  ;;  %v753_v61 = vmax.f32 %v751_v49, %v752_v53  ;;  %v759_v62 = vrot.slane %v758_v55, 4  ;;  %v780_v4 = vrot.slane %v779_v58, 4 }
  0x65   : > { %v740_v59 = vrot.slane %v739_v51, 2  ;;  %v746_v60 = vmax.f32 %v744_v48, %v745_v52  ;;  %v768_v63 = vrot.slane %v767_v56, 2  ;;  %vm1197_vm4 = vcmask 1044484  }
  0x66   : > { %v774_v0 = vmax.f32 %v772_v54, %v773_v57  ;;  %v351_v5 = vrot.slane %v282_v33, %v2563_v11  ;;  %v754_v8 = vrot.slane %v753_v61, 2  ;;  %v760_v9 = vmax.f32 %v758_v55, %v759_v62 }
  0x67   : > { %v741_v6 = vmax.f32 %v739_v51, %v740_v59  ;;  %v747_v7 = vrot.slane %v746_v60, 2  ;;  %vm1199_vm5 = vcmask 1045509   ;;  %v769_v10 = vmax.f32 %v767_v56, %v768_v63 }
  0x68   : > { %v775_v12 = vrot.slane %v774_v0, 2  ;;  %v781_v13 = vmax.f32 %v779_v58, %v780_v4  ;;  %vm1201_vm6 = vcmask 1046534   ;;  %v358_v14 = vrot.slane %v344_v42, %v2563_v11 }
  0x69   : > { %v742_v15 = vrot.slane %v741_v6, 1  ;;  %v748_v16 = vmax.f32 %v746_v60, %v747_v7  ;;  %v755_v17 = vmax.f32 %v753_v61, %v754_v8  ;;  %v761_v18 = vrot.slane %v760_v9, 2 }
  0x6a   : > { %vm1203_vm7 = vcmask 1047559   ;;  %v770_v19 = vrot.slane %v769_v10, 1  ;;  %v776_v20 = vmax.f32 %v774_v0, %v775_v12  ;;  %v782_v21 = vrot.slane %v781_v13, 2 }
  0x6b   : > { %vm1263_vm8 = vcmask 1040384   ;;  %v359_v22 = vcombine.high %v351_v5, %v351_v5  ;;  %v743_v23 = vmax.f32 %v741_v6, %v742_v15  ;;  %v749_v24 = vrot.slane %v748_v16, 1 }
  0x6c   : > { %v756_v25 = vrot.slane %v755_v17, 1  ;;  %v762_v26 = vmax.f32 %v760_v9, %v761_v18  ;;  %v771_v27 = vmax.f32 %v769_v10, %v770_v19  ;;  %v777_v28 = vrot.slane %v776_v20, 1  ;;  %v258_v19 = vld [vmem:[%s2540_s9 + $0x58] sm:$0xff] }
  0x6d   : > { %v783_v29 = vmax.f32 %v781_v13, %v782_v21  ;;  %v360_v31 = vcombine.high %v358_v14, %v358_v14  ;;  %v750_v32 = vmax.f32 %v748_v16, %v749_v24  ;;  %v361_v36 = vcombine.high %v2585_v34, %v2585_v34 }
  0x6e   : > { %v757_v33 = vmax.f32 %v755_v17, %v756_v25  ;;  %v763_v35 = vrot.slane %v762_v26, 1  ;;  %v778_v39 = vmax.f32 %v776_v20, %v777_v28  ;;  %v368_v41 = vrot.slane %v2585_v34, %v2563_v11 }
  0x6f   : > { %v784_v40 = vrot.slane %v783_v29, 1  ;;  %v681_v42 = vsel %vm680_vm1, %v351_v5, -inf  ;;  %v1205_v45 = vsel %vm1193_vm2, %v750_v32, %v743_v23  ;;  %v2615_v46 = vrot.slane %v361_v36, %v2563_v11 }
  0x70   : > { %v764_v44 = vmax.f32 %v762_v26, %v763_v35  ;;  %v682_v47 = vrot.slane %v681_v42, 4  ;;  %v1206_v49 = vsel %vm1195_vm3, %v757_v33, %v1205_v45  ;;  %v376_v50 = vcombine.high %v368_v41, %v368_v41 }
  0x71   : > { %v785_v48 = vmax.f32 %v783_v29, %v784_v40  ;;  %v688_v51 = vsel %vm680_vm1, %v359_v22, -inf  ;;  %v695_v34 = vsel %vm680_vm1, %v358_v14, -inf  ;;  %v702_v57 = vsel %vm680_vm1, %v360_v31, -inf }
  0x72   : > { %v1207_v52 = vsel %vm1197_vm4, %v764_v44, %v1206_v49  ;;  %v683_v53 = vmax.f32 %v681_v42, %v682_v47  ;;  %v689_v54 = vrot.slane %v688_v51, 4  ;;  %v696_v56 = vrot.slane %v695_v34, 4 }
  0x73   : > { %v1208_v55 = vsel %vm1199_vm5, %v771_v27, %v1207_v52  ;;  %v709_v58 = vsel %vm680_vm1, %v368_v41, -inf  ;;  %v703_v62 = vrot.slane %v702_v57, 4  ;;  %v716_v5 = vsel %vm680_vm1, %v376_v50, -inf }
  0x74   : > { %v1209_v59 = vsel %vm1201_vm6, %v778_v39, %v1208_v55  ;;  %v684_v60 = vrot.slane %v683_v53, 2  ;;  %v690_v61 = vmax.f32 %v688_v51, %v689_v54  ;;  %v697_v0 = vmax.f32 %v695_v34, %v696_v56 }
  0x75   : > { %v1210_v63 = vsel %vm1203_vm7, %v785_v48, %v1209_v59  ;;  %v710_v4 = vrot.slane %v709_v58, 4  ;;  %v704_v9 = vmax.f32 %v702_v57, %v703_v62  ;;  %v717_v13 = vrot.slane %v716_v5, 4 }
  0x76   : > { %v2628_v6 = vsel %vm1263_vm8, 0.0, %v1210_v63  ;;  %v685_v7 = vmax.f32 %v683_v53, %v684_v60  ;;  %v691_v8 = vrot.slane %v690_v61, 2  ;;  %v698_v10 = vrot.slane %v697_v0, 2 }
  0x77   : > { %1394 = vrot.lane.b32.xlu1 %v2628_v6, %s2354_s12  ;;  %v711_v12 = vmax.f32 %v709_v58, %v710_v4  ;;  %v723_v14 = vsel %vm680_vm1, %v2615_v46, -inf  ;;  %v705_v17 = vrot.slane %v704_v9, 2  ;;  %v718_v22 = vmax.f32 %v716_v5, %v717_v13 }
  0x78   : > { %v686_v15 = vrot.slane %v685_v7, 1  ;;  %v692_v16 = vmax.f32 %v690_v61, %v691_v8  ;;  %v724_v18 = vrot.slane %v723_v14, 4  ;;  %v699_v20 = vmax.f32 %v697_v0, %v698_v10 }
  0x79   : > { %v712_v21 = vrot.slane %v711_v12, 2  ;;  %v294_v23 = vmax.f32 %v2582_v30, %v2589_v37  ;;  %v706_v26 = vmax.f32 %v704_v9, %v705_v17  ;;  %v719_v31 = vrot.slane %v718_v22, 2 }
  0x7a   : > { %v687_v24 = vmax.f32 %v685_v7, %v686_v15  ;;  %v693_v25 = vrot.slane %v692_v16, 1  ;;  %v725_v27 = vmax.f32 %v723_v14, %v724_v18  ;;  %v700_v28 = vrot.slane %v699_v20, 1  ;;  %v259_v15 = vld [vmem:[%s2540_s9 + $0x60] sm:$0xff] }
  0x7b   : > { %v713_v29 = vmax.f32 %v711_v12, %v712_v21  ;;  %1471 = vrot.lane.b32.xlu1 %v2628_v6, %s2355_s13  ;;  %v296_v32 = vsel %vm279_vm0, %v258_v19, -inf  ;;  %v707_v35 = vrot.slane %v706_v26, 1  ;;  %v720_v37 = vmax.f32 %v718_v22, %v719_v31 }
  0x7c   : > { %v694_v33 = vmax.f32 %v692_v16, %v693_v25  ;;  %v726_v36 = vrot.slane %v725_v27, 2  ;;  %v297_v39 = vmax.f32 %v2592_v38, %v296_v32  ;;  %v701_v40 = vmax.f32 %v699_v20, %v700_v28 }
  0x7d   : > { %v714_v30 = vrot.slane %v713_v29, 1  ;;  %v412_v41 = vcombine.high %v294_v23, %v294_v23  ;;  %v708_v42 = vmax.f32 %v706_v26, %v707_v35  ;;  %v419_v47 = vrot.slane %v294_v23, %v2563_v11 }
  0x7e   : > { %v727_v44 = vmax.f32 %v725_v27, %v726_v36  ;;  %v1194_v45 = vsel %vm1193_vm2, %v694_v33, %v687_v24  ;;  %v721_v49 = vrot.slane %v720_v37, 1  ;;  %v429_v54 = vcombine.high %v297_v39, %v297_v39  ;;  %v261_v24 = vld [vmem:[%s2540_s9 + $0x70] sm:$0xff] }
  0x7f   : > { %v715_v48 = vmax.f32 %v713_v29, %v714_v30  ;;  %v1196_v50 = vsel %vm1195_vm3, %v701_v40, %v1194_v45  ;;  %v426_v51 = vrot.slane %v412_v41, %v2563_v11  ;;  %v427_v38 = vcombine.high %v419_v47, %v419_v47 }
  0x80   : > { %v728_v52 = vrot.slane %v727_v44, 1  ;;  %v1198_v53 = vsel %vm1197_vm4, %v708_v42, %v1196_v50  ;;  %v722_v34 = vmax.f32 %v720_v37, %v721_v49  ;;  %v436_v57 = vrot.slane %v297_v39, %v2563_v11  ;;  %v262_v49 = vld [vmem:[%s2540_s9 + $0x78] sm:$0xff] }
  0x81   : > { %v1200_v55 = vsel %vm1199_vm5, %v715_v48, %v1198_v53  ;;  %v428_v56 = vcombine.high %v426_v51, %v426_v51  ;;  %v2649_v59 = vrot.slane %v429_v54, %v2563_v11  ;;  %v793_v60 = vsel %vm680_vm1, %v419_v47, -inf }
  0x82   : > { %v729_v58 = vmax.f32 %v727_v44, %v728_v52  ;;  %v800_v61 = vsel %vm680_vm1, %v427_v38, -inf  ;;  %v1202_v62 = vsel %vm1201_vm6, %v722_v34, %v1200_v55  ;;  %v444_v63 = vcombine.high %v436_v57, %v436_v57  ;;  %v260_v44 = vld [vmem:[%s2540_s9 + $0x68] sm:$0xff] }
  0x83   : > { %v794_v0 = vrot.slane %v793_v60, 4  ;;  %v801_v4 = vrot.slane %v800_v61, 4  ;;  %v807_v7 = vsel %vm680_vm1, %v426_v51, -inf  ;;  %v814_v8 = vsel %vm680_vm1, %v428_v56, -inf }
  0x84   : > { %v1204_v5 = vsel %vm1203_vm7, %v729_v58, %v1202_v62  ;;  %v821_v9 = vsel %vm680_vm1, %v436_v57, -inf  ;;  %v808_v14 = vrot.slane %v807_v7, 4  ;;  %v815_v16 = vrot.slane %v814_v8, 4 }
  0x85   : > { %v2659_v10 = vsel %vm1263_vm8, 0.0, %v1204_v5  ;;  %v795_v12 = vmax.f32 %v793_v60, %v794_v0  ;;  %v802_v13 = vmax.f32 %v800_v61, %v801_v4  ;;  %v822_v17 = vrot.slane %v821_v9, 4 }
  0x86   : > { %1392 = vrot.lane.b32.xlu0 %v2659_v10, %s2354_s12  ;;  %v828_v18 = vsel %vm680_vm1, %v444_v63, -inf  ;;  %v835_v19 = vsel %vm680_vm1, %v2649_v59, -inf  ;;  %v809_v22 = vmax.f32 %v807_v7, %v808_v14  ;;  %v816_v25 = vmax.f32 %v814_v8, %v815_v16 }
  0x87   : > { %v796_v20 = vrot.slane %v795_v12, 2  ;;  %v803_v21 = vrot.slane %v802_v13, 2  ;;  %v829_v23 = vrot.slane %v828_v18, 4  ;;  %v823_v26 = vmax.f32 %v821_v9, %v822_v17 }
  0x88   : > { %v836_v27 = vrot.slane %v835_v19, 4  ;;  %v298_v28 = vsel %vm279_vm0, %v259_v15, -inf  ;;  %v810_v32 = vrot.slane %v809_v22, 2  ;;  %v817_v35 = vrot.slane %v816_v25, 2 }
  0x89   : > { %v797_v29 = vmax.f32 %v795_v12, %v796_v20  ;;  %v804_v31 = vmax.f32 %v802_v13, %v803_v21  ;;  %v830_v33 = vmax.f32 %v828_v18, %v829_v23  ;;  %v824_v36 = vrot.slane %v823_v26, 2 }
  0x8a   : > { %v837_v39 = vmax.f32 %v835_v19, %v836_v27  ;;  %v299_v40 = vsel %vm279_vm0, %v261_v24, -inf  ;;  %v811_v41 = vmax.f32 %v809_v22, %v810_v32  ;;  %v818_v45 = vmax.f32 %v816_v25, %v817_v35 }
  0x8b   : > { %v798_v30 = vrot.slane %v797_v29, 1  ;;  %v805_v37 = vrot.slane %v804_v31, 1  ;;  %v831_v42 = vrot.slane %v830_v33, 2  ;;  %v825_v47 = vmax.f32 %v823_v26, %v824_v36 }
  0x8c   : > { %v838_v48 = vrot.slane %v837_v39, 2  ;;  %v300_v50 = vmax.f32 %v298_v28, %v299_v40  ;;  %v812_v53 = vrot.slane %v811_v41, 1  ;;  %v819_v54 = vrot.slane %v818_v45, 1 }
  0x8d   : > { %v799_v51 = vmax.f32 %v797_v29, %v798_v30  ;;  %v806_v52 = vmax.f32 %v804_v31, %v805_v37  ;;  %v832_v38 = vmax.f32 %v830_v33, %v831_v42  ;;  %v826_v34 = vrot.slane %v825_v47, 1 }
  0x8e   : > { %v839_v55 = vmax.f32 %v837_v39, %v838_v48  ;;  %v301_v56 = vsel %vm279_vm0, %v260_v44, -inf  ;;  %v813_v57 = vmax.f32 %v811_v41, %v812_v53  ;;  %v302_v61 = vsel %vm279_vm0, %v262_v49, -inf }
  0x8f   : > { %v833_v58 = vrot.slane %v832_v38, 1  ;;  %v1211_v60 = vsel %vm1193_vm2, %v806_v52, %v799_v51  ;;  %v820_v62 = vmax.f32 %v818_v45, %v819_v54  ;;  %v827_v63 = vmax.f32 %v825_v47, %v826_v34 }
  0x90   : > { %v840_v0 = vrot.slane %v839_v55, 1  ;;  %v303_v4 = vmax.f32 %v301_v56, %v302_v61  ;;  %v1212_v7 = vsel %vm1195_vm3, %v813_v57, %v1211_v60  ;;  %v446_v8 = vcombine.high %v300_v50, %v300_v50 }
  0x91   : > { %v834_v5 = vmax.f32 %v832_v38, %v833_v58  ;;  %v453_v9 = vrot.slane %v300_v50, %v2563_v11  ;;  %v1213_v13 = vsel %vm1197_vm4, %v820_v62, %v1212_v7  ;;  %v377_v47 = vcombine.high %v2615_v46, %v2615_v46 }
  0x92   : > { %v841_v12 = vmax.f32 %v839_v55, %v840_v0  ;;  %v463_v14 = vcombine.high %v303_v4, %v303_v4  ;;  %v470_v15 = vrot.slane %v303_v4, %v2563_v11  ;;  %v1214_v16 = vsel %vm1199_vm5, %v827_v63, %v1213_v13 }
  0x93   : > { %v460_v17 = vrot.slane %v446_v8, %v2563_v11  ;;  %v461_v18 = vcombine.high %v453_v9, %v453_v9  ;;  %v849_v19 = vsel %vm680_vm1, %v453_v9, -inf  ;;  %v1215_v20 = vsel %vm1201_vm6, %v834_v5, %v1214_v16 }
  0x94   : > { %v2684_v21 = vrot.slane %v463_v14, %v2563_v11  ;;  %v478_v22 = vcombine.high %v470_v15, %v470_v15  ;;  %v850_v23 = vrot.slane %v849_v19, 4  ;;  %v1216_v24 = vsel %vm1203_vm7, %v841_v12, %v1215_v20 }
  0x95   : > { %v462_v25 = vcombine.high %v460_v17, %v460_v17  ;;  %v856_v26 = vsel %vm680_vm1, %v461_v18, -inf  ;;  %v863_v27 = vsel %vm680_vm1, %v460_v17, -inf  ;;  %v2690_v28 = vsel %vm1263_vm8, 0.0, %v1216_v24 }
  0x96   : > { %v851_v29 = vmax.f32 %v849_v19, %v850_v23  ;;  %v857_v31 = vrot.slane %v856_v26, 4  ;;  %v864_v32 = vrot.slane %v863_v27, 4  ;;  %1473 = vrot.lane.b32.xlu0 %v2690_v28, %s2355_s13  ;;  %1396 = vrot.lane.b32.xlu1 %v2690_v28, %s2354_s12  ;;  %v877_v35 = vsel %vm680_vm1, %v470_v15, -inf }
  0x97   : > { %v870_v33 = vsel %vm680_vm1, %v462_v25, -inf  ;;  %v884_v36 = vsel %vm680_vm1, %v478_v22, -inf  ;;  %v891_v39 = vsel %vm680_vm1, %v2684_v21, -inf  ;;  %v878_v42 = vrot.slane %v877_v35, 4 }
  0x98   : > { %v852_v40 = vrot.slane %v851_v29, 2  ;;  %v858_v30 = vmax.f32 %v856_v26, %v857_v31  ;;  %v865_v37 = vmax.f32 %v863_v27, %v864_v32  ;;  %v871_v41 = vrot.slane %v870_v33, 4 }
  0x99   : > { %v885_v44 = vrot.slane %v884_v36, 4  ;;  %v892_v45 = vrot.slane %v891_v39, 4  ;;  %v879_v52 = vmax.f32 %v877_v35, %v878_v42  ;;  %v730_v54 = vsel %vm680_vm1, %v377_v47, -inf }
  0x9a   : > { %v853_v48 = vmax.f32 %v851_v29, %v852_v40  ;;  %v859_v49 = vrot.slane %v858_v30, 2  ;;  %v866_v50 = vrot.slane %v865_v37, 2  ;;  %v872_v51 = vmax.f32 %v870_v33, %v871_v41 }
  0x9b   : > { %v886_v53 = vmax.f32 %v884_v36, %v885_v44  ;;  %v893_v38 = vmax.f32 %v891_v39, %v892_v45  ;;  %v880_v58 = vrot.slane %v879_v52, 2  ;;  %v731_v62 = vrot.slane %v730_v54, 4 }
  0x9c   : > { %v854_v34 = vrot.slane %v853_v48, 1  ;;  %v860_v55 = vmax.f32 %v858_v30, %v859_v49  ;;  %v867_v56 = vmax.f32 %v865_v37, %v866_v50  ;;  %v873_v57 = vrot.slane %v872_v51, 2  ;;  %v263_v30 = vld [vmem:[%s2540_s9 + $0x80] sm:$0xff]  ;;  %v265_v50 = vld [vmem:[%s2540_s9 + $0x90] sm:$0xff] }
  0x9d   : > { %v887_v60 = vrot.slane %v886_v53, 2  ;;  %v894_v61 = vrot.slane %v893_v38, 2  ;;  %v881_v5 = vmax.f32 %v879_v52, %v880_v58  ;;  %v732_v9 = vmax.f32 %v730_v54, %v731_v62 }
  0x9e   : > { %v855_v63 = vmax.f32 %v853_v48, %v854_v34  ;;  %v861_v0 = vrot.slane %v860_v55, 1  ;;  %v868_v46 = vrot.slane %v867_v56, 1  ;;  %v874_v4 = vmax.f32 %v872_v51, %v873_v57 }
  0x9f   : > { %v888_v7 = vmax.f32 %v886_v53, %v887_v60  ;;  %v895_v8 = vmax.f32 %v893_v38, %v894_v61  ;;  %v1346_v15 = vrot.slane %v2659_v10, 2  ;;  %v882_v16 = vrot.slane %v881_v5, 1 }
  0xa0   : > { %v862_v12 = vmax.f32 %v860_v55, %v861_v0  ;;  %v869_v13 = vmax.f32 %v867_v56, %v868_v46  ;;  %v875_v14 = vrot.slane %v874_v4, 1  ;;  %v733_v19 = vrot.slane %v732_v9, 2  ;;  %v266_v56 = vld [vmem:[%s2540_s9 + $0x98] sm:$0xff] }
  0xa1   : > { %v889_v17 = vrot.slane %v888_v7, 1  ;;  %v896_v18 = vrot.slane %v895_v8, 1  ;;  %vm1343_vm9 = vcmask 1045504   ;;  %vm1295_vm10 = vcmask 1046528  }
  0xa2   : > { %v876_v20 = vmax.f32 %v874_v4, %v875_v14  ;;  %v1217_v22 = vsel %vm1193_vm2, %v862_v12, %v855_v63  ;;  %v1298_v23 = vrot.slane %v2659_v10, 1  ;;  %v411_v24 = vcombine.high %v2597_v43, %v2597_v43 }
  0xa3   : > { %v883_v25 = vmax.f32 %v881_v5, %v882_v16  ;;  %v890_v26 = vmax.f32 %v888_v7, %v889_v17  ;;  %v897_v27 = vmax.f32 %v895_v8, %v896_v18  ;;  %v1218_v29 = vsel %vm1195_vm3, %v869_v13, %v1217_v22 }
  0xa4   : > { %v1219_v31 = vsel %vm1197_vm4, %v876_v20, %v1218_v29  ;;  %v734_v32 = vmax.f32 %v732_v9, %v733_v19  ;;  %v786_v33 = vsel %vm680_vm1, %v411_v24, -inf  ;;  %v1301_v35 = vrot.slane %v2628_v6, 1  ;;  %v267_v9 = vld [vmem:[%s2540_s9 + $0xa0] sm:$0xff] }
  0xa5   : > { %v1220_v36 = vsel %vm1199_vm5, %v883_v25, %v1219_v31  ;;  %v787_v39 = vrot.slane %v786_v33, 4  ;;  %v1349_v40 = vrot.slane %v2628_v6, 2  ;;  %v445_v43 = vcombine.high %v2649_v59, %v2649_v59 }
  0xa6   : > { %v1221_v37 = vsel %vm1201_vm6, %v890_v26, %v1220_v36  ;;  %v735_v41 = vrot.slane %v734_v32, 1  ;;  %v1304_v42 = vrot.slane %v2690_v28, 1  ;;  %v1352_v44 = vrot.slane %v2690_v28, 2 }
  0xa7   : > { %v1222_v45 = vsel %vm1203_vm7, %v897_v27, %v1221_v37  ;;  %v788_v47 = vmax.f32 %v786_v33, %v787_v39  ;;  %v842_v48 = vsel %vm680_vm1, %v445_v43, -inf  ;;  %v479_v49 = vcombine.high %v2684_v21, %v2684_v21  ;;  %v264_v21 = vld [vmem:[%s2540_s9 + $0x88] sm:$0xff] }
  0xa8   : > { %v2727_v59 = vsel %vm1263_vm8, 0.0, %v1222_v45  ;;  %v736_v51 = vmax.f32 %v734_v32, %v735_v41  ;;  %v843_v52 = vrot.slane %v842_v48, 4  ;;  %v304_v53 = vsel %vm279_vm0, %v263_v30, -inf }
  0xa9   : > { %1398 = vrot.lane.b32.xlu0 %v2727_v59, %s2354_s12  ;;  %v789_v38 = vrot.slane %v788_v47, 2  ;;  %v898_v54 = vsel %vm680_vm1, %v479_v49, -inf  ;;  %v1307_v34 = vrot.slane %v2727_v59, 1  ;;  %v1355_v55 = vrot.slane %v2727_v59, 2 }
  0xaa   : > { %v1272_v57 = vsel %vm1263_vm8, %v736_v51, 0.0  ;;  %v844_v58 = vmax.f32 %v842_v48, %v843_v52  ;;  %v899_v60 = vrot.slane %v898_v54, 4  ;;  %v305_v61 = vsel %vm279_vm0, %v265_v50, -inf }
  0xab   : > { %v1347_v62 = vrot.slane %v1272_v57, 2  ;;  %v1299_v63 = vrot.slane %v1272_v57, 1  ;;  %v790_v0 = vmax.f32 %v788_v47, %v789_v38  ;;  %v306_v46 = vmax.f32 %v304_v53, %v305_v61 }
  0xac   : > { %v845_v4 = vrot.slane %v844_v58, 2  ;;  %v900_v5 = vmax.f32 %v898_v54, %v899_v60  ;;  %v307_v7 = vsel %vm279_vm0, %v264_v21, -inf  ;;  %v308_v8 = vsel %vm279_vm0, %v266_v56, -inf }
  0xad   : > { %v1348_v12 = vsel %vm1343_vm9, %v1346_v15, %v1347_v62  ;;  %v1300_v13 = vsel %vm1295_vm10, %v1298_v23, %v1299_v63  ;;  %v791_v14 = vrot.slane %v790_v0, 1  ;;  %v309_v16 = vmax.f32 %v307_v7, %v308_v8 }
  0xae   : > { %1369 = vrot.lane.b32.xlu1 %v1348_v12, %s2352_s21  ;;  %1321 = vrot.lane.b32.xlu0 %v1300_v13, %s2353_s23  ;;  %v846_v17 = vmax.f32 %v844_v58, %v845_v4  ;;  %v901_v18 = vrot.slane %v900_v5, 2  ;;  %v480_v19 = vcombine.high %v306_v46, %v306_v46  ;;  %v487_v20 = vrot.slane %v306_v46, %v2563_v11 }
  0xaf   : > { %v792_v22 = vmax.f32 %v790_v0, %v791_v14  ;;  %v497_v24 = vcombine.high %v309_v16, %v309_v16  ;;  %v504_v25 = vrot.slane %v309_v16, %v2563_v11  ;;  %v2749_v26 = vsel %vm279_vm0, %v267_v9, -inf }
  0xb0   : > { %v847_v15 = vrot.slane %v846_v17, 1  ;;  %v902_v23 = vmax.f32 %v900_v5, %v901_v18  ;;  %v494_v27 = vrot.slane %v480_v19, %v2563_v11  ;;  %v495_v29 = vcombine.high %v487_v20, %v487_v20 }
  0xb1   : > { %v1273_v31 = vsel %vm1263_vm8, %v792_v22, 0.0  ;;  %v511_v32 = vrot.slane %v497_v24, %v2563_v11  ;;  %v512_v33 = vcombine.high %v504_v25, %v504_v25  ;;  %v905_v36 = vsel %vm680_vm1, %v487_v20, -inf }
  0xb2   : > { %v1302_v39 = vrot.slane %v1273_v31, 1  ;;  %1420 = vrot.lane.b32.xlu0 %v1300_v13, %s2356_s10  ;;  %v1350_v43 = vrot.slane %v1273_v31, 2  ;;  %v848_v30 = vmax.f32 %v846_v17, %v847_v15  ;;  %v903_v37 = vrot.slane %v902_v23, 1 }
  0xb3   : > { %v496_v41 = vcombine.high %v494_v27, %v494_v27  ;;  %v513_v45 = vcombine.high %v511_v32, %v511_v32  ;;  %v906_v47 = vrot.slane %v905_v36, 4  ;;  %v912_v48 = vsel %vm680_vm1, %v495_v29, -inf }
  0xb4   : > { %v1303_v49 = vsel %vm1295_vm10, %v1301_v35, %v1302_v39  ;;  %v2763_v50 = vsel %vm1343_vm9, %v1349_v40, %v1350_v43  ;;  %v1274_v51 = vsel %vm1263_vm8, %v848_v30, 0.0  ;;  %v904_v52 = vmax.f32 %v902_v23, %v903_v37  ;;  %v269_v23 = vld [vmem:[%s2540_s9 + $0xb0] sm:$0xff] }
  0xb5   : > { %1323 = vrot.lane.b32.xlu1 %v1303_v49, %s2353_s23  ;;  %v1305_v53 = vrot.slane %v1274_v51, 1  ;;  %v1353_v38 = vrot.slane %v1274_v51, 2  ;;  %v907_v54 = vmax.f32 %v905_v36, %v906_v47  ;;  %v913_v21 = vrot.slane %v912_v48, 4 }
  0xb6   : > { %1422 = vrot.lane.b32.xlu0 %v1303_v49, %s2356_s10  ;;  %v1275_v56 = vsel %vm1263_vm8, %v904_v52, 0.0  ;;  %v919_v35 = vsel %vm680_vm1, %v494_v27, -inf  ;;  %v926_v57 = vsel %vm680_vm1, %v496_v41, -inf  ;;  %v933_v40 = vsel %vm680_vm1, %v504_v25, -inf }
  0xb7   : > { %v2775_v58 = vsel %vm1295_vm10, %v1304_v42, %v1305_v53  ;;  %v2780_v60 = vsel %vm1343_vm9, %v1352_v44, %v1353_v38  ;;  %v1308_v61 = vrot.slane %v1275_v56, 1  ;;  %v1356_v62 = vrot.slane %v1275_v56, 2  ;;  %v268_v53 = vld [vmem:[%s2540_s9 + $0xa8] sm:$0xff]  ;;  %v270_v38 = vld [vmem:[%s2540_s9 + $0xb8] sm:$0xff] }
  0xb8   : > { %v908_v63 = vrot.slane %v907_v54, 2  ;;  %v914_v0 = vmax.f32 %v912_v48, %v913_v21  ;;  %v920_v46 = vrot.slane %v919_v35, 4  ;;  %v927_v4 = vrot.slane %v926_v57, 4 }
  0xb9   : > { %1447 = vrot.lane.b32.xlu1 %v1348_v12, %s2357_s28  ;;  %v2786_v5 = vsel %vm1295_vm10, %v1307_v34, %v1308_v61  ;;  %v2791_v42 = vsel %vm1343_vm9, %v1355_v55, %v1356_v62  ;;  %v934_v44 = vrot.slane %v933_v40, 4  ;;  %v940_v7 = vsel %vm680_vm1, %v512_v33, -inf }
  0xba   : > { %1325 = vrot.lane.b32.xlu0 %v2775_v58, %s2353_s23  ;;  %v909_v8 = vmax.f32 %v907_v54, %v908_v63  ;;  %v915_v9 = vrot.slane %v914_v0, 2  ;;  %v921_v12 = vmax.f32 %v919_v35, %v920_v46  ;;  %v928_v13 = vmax.f32 %v926_v57, %v927_v4  ;;  %v271_v4 = vld [vmem:[%s2540_s9 + $0xc0] sm:$0xff] }
  0xbb   : > { %v935_v14 = vmax.f32 %v933_v40, %v934_v44  ;;  %v941_v16 = vrot.slane %v940_v7, 4  ;;  %v947_v34 = vsel %vm680_vm1, %v511_v32, -inf  ;;  %v954_v17 = vsel %vm680_vm1, %v513_v45, -inf }
  0xbc   : > { %v910_v18 = vrot.slane %v909_v8, 1  ;;  %v916_v55 = vmax.f32 %v914_v0, %v915_v9  ;;  %v922_v19 = vrot.slane %v921_v12, 2  ;;  %v929_v20 = vrot.slane %v928_v13, 2 }
  0xbd   : > { %1371 = vrot.lane.b32.xlu1 %v2763_v50, %s2352_s21  ;;  %v936_v22 = vrot.slane %v935_v14, 2  ;;  %v942_v24 = vmax.f32 %v940_v7, %v941_v16  ;;  %v948_v25 = vrot.slane %v947_v34, 4  ;;  %v955_v15 = vrot.slane %v954_v17, 4 }
  0xbe   : > { %1449 = vrot.lane.b32.xlu0 %v2763_v50, %s2357_s28  ;;  %v911_v27 = vmax.f32 %v909_v8, %v910_v18  ;;  %v917_v29 = vrot.slane %v916_v55, 1  ;;  %v923_v31 = vmax.f32 %v921_v12, %v922_v19  ;;  %v930_v32 = vmax.f32 %v928_v13, %v929_v20 }
  0xbf   : > { %v937_v33 = vmax.f32 %v935_v14, %v936_v22  ;;  %v943_v36 = vrot.slane %v942_v24, 2  ;;  %v949_v39 = vmax.f32 %v947_v34, %v948_v25  ;;  %v956_v43 = vmax.f32 %v954_v17, %v955_v15 }
  0xc0   : > { %v918_v30 = vmax.f32 %v916_v55, %v917_v29  ;;  %v924_v37 = vrot.slane %v923_v31, 1  ;;  %v931_v41 = vrot.slane %v930_v32, 1  ;;  %v311_v45 = vsel %vm279_vm0, %v269_v23, -inf }
  0xc1   : > { %1495 = vrot.lane.b32.xlu1 %v1303_v49, %s2358_s29  ;;  %v938_v47 = vrot.slane %v937_v33, 1  ;;  %v944_v48 = vmax.f32 %v942_v24, %v943_v36  ;;  %v950_v51 = vrot.slane %v949_v39, 2  ;;  %v957_v52 = vrot.slane %v956_v43, 2 }
  0xc2   : > { %1373 = vrot.lane.b32.xlu0 %v2780_v60, %s2352_s21  ;;  %v925_v54 = vmax.f32 %v923_v31, %v924_v37  ;;  %v932_v21 = vmax.f32 %v930_v32, %v931_v41  ;;  %v1223_v56 = vsel %vm1193_vm2, %v918_v30, %v911_v27  ;;  %v312_v35 = vmax.f32 %v2749_v26, %v311_v45 }
  0xc3   : > { %v939_v57 = vmax.f32 %v937_v33, %v938_v47  ;;  %v945_v40 = vrot.slane %v944_v48, 1  ;;  %v951_v61 = vmax.f32 %v949_v39, %v950_v51  ;;  %v958_v49 = vmax.f32 %v956_v43, %v957_v52 }
  0xc4   : > { %v1224_v62 = vsel %vm1195_vm3, %v925_v54, %v1223_v56  ;;  %v313_v63 = vsel %vm279_vm0, %v268_v53, -inf  ;;  %v314_v0 = vsel %vm279_vm0, %v270_v38, -inf  ;;  %v514_v46 = vcombine.high %v312_v35, %v312_v35 }
  0xc5   : > { %1424 = vrot.lane.b32.xlu1 %v2775_v58, %s2356_s10  ;;  %v946_v44 = vmax.f32 %v944_v48, %v945_v40  ;;  %v952_v7 = vrot.slane %v951_v61, 1  ;;  %v959_v8 = vrot.slane %v958_v49, 1  ;;  %v1225_v26 = vsel %vm1197_vm4, %v932_v21, %v1224_v62 }
  0xc6   : > { %1497 = vrot.lane.b32.xlu0 %v2775_v58, %s2358_s29  ;;  %v1226_v9 = vsel %vm1199_vm5, %v939_v57, %v1225_v26  ;;  %v315_v12 = vmax.f32 %v313_v63, %v314_v0  ;;  %v521_v13 = vrot.slane %v312_v35, %v2563_v11  ;;  %v528_v14 = vrot.slane %v514_v46, %v2563_v11 }
  0xc7   : > { %v953_v16 = vmax.f32 %v951_v61, %v952_v7  ;;  %v960_v34 = vmax.f32 %v958_v49, %v959_v8  ;;  %v1227_v17 = vsel %vm1201_vm6, %v946_v44, %v1226_v9  ;;  %v2825_v18 = vsel %vm279_vm0, %v271_v4, -inf }
  0xc8   : > { %v529_v55 = vcombine.high %v521_v13, %v521_v13  ;;  %v530_v19 = vcombine.high %v528_v14, %v528_v14  ;;  %v531_v20 = vcombine.high %v315_v12, %v315_v12  ;;  %v538_v22 = vrot.slane %v315_v12, %v2563_v11 }
  0xc9   : > { %1519 = vrot.lane.b32.xlu1 %v2763_v50, %s2359_s11  ;;  %v1228_v58 = vsel %vm1203_vm7, %v953_v16, %v1227_v17  ;;  %v1276_v24 = vsel %vm1263_vm8, %v960_v34, 0.0  ;;  %v961_v25 = vsel %vm680_vm1, %v521_v13, -inf  ;;  %v975_v15 = vsel %vm680_vm1, %v528_v14, -inf  ;;  %v273_v17 = vld [vmem:[%s2540_s9 + $0xd0] sm:$0xff] }
  0xca   : > { %1327 = vrot.lane.b32.xlu0 %v2786_v5, %s2353_s23  ;;  %v2837_v23 = vsel %vm1263_vm8, 0.0, %v1228_v58  ;;  %v1311_v27 = vrot.slane %v1276_v24, 1  ;;  %v1359_v29 = vrot.slane %v1276_v24, 2  ;;  %v545_v31 = vrot.slane %v531_v20, %v2563_v11 }
  0xcb   : > { %v1310_v50 = vrot.slane %v2837_v23, 1  ;;  %v1358_v32 = vrot.slane %v2837_v23, 2  ;;  %v546_v33 = vcombine.high %v538_v22, %v538_v22  ;;  %v962_v36 = vrot.slane %v961_v25, 4 }
  0xcc   : > { %v968_v39 = vsel %vm680_vm1, %v529_v55, -inf  ;;  %v976_v43 = vrot.slane %v975_v15, 4  ;;  %v982_v30 = vsel %vm680_vm1, %v530_v19, -inf  ;;  %v989_v37 = vsel %vm680_vm1, %v538_v22, -inf }
  0xcd   : > { %1426 = vrot.lane.b32.xlu1 %v2786_v5, %s2356_s10  ;;  %v2848_v41 = vsel %vm1295_vm10, %v1310_v50, %v1311_v27  ;;  %v2851_v45 = vsel %vm1343_vm9, %v1358_v32, %v1359_v29  ;;  %v963_v47 = vmax.f32 %v961_v25, %v962_v36  ;;  %v969_v48 = vrot.slane %v968_v39, 4  ;;  %v272_v27 = vld [vmem:[%s2540_s9 + $0xc8] sm:$0xff]  ;;  %v274_v32 = vld [vmem:[%s2540_s9 + $0xd8] sm:$0xff] }
  0xce   : > { %1451 = vrot.lane.b32.xlu0 %v2780_v60, %s2357_s28  ;;  %v977_v51 = vmax.f32 %v975_v15, %v976_v43  ;;  %v983_v52 = vrot.slane %v982_v30, 4  ;;  %v990_v53 = vrot.slane %v989_v37, 4  ;;  %v996_v38 = vsel %vm680_vm1, %v546_v33, -inf }
  0xcf   : > { %v964_v54 = vrot.slane %v963_v47, 2  ;;  %v970_v21 = vmax.f32 %v968_v39, %v969_v48  ;;  %v997_v56 = vrot.slane %v996_v38, 4  ;;  %v1003_v35 = vsel %vm680_vm1, %v545_v31, -inf }
  0xd0   : > { %v978_v57 = vrot.slane %v977_v51, 2  ;;  %v984_v40 = vmax.f32 %v982_v30, %v983_v52  ;;  %v991_v61 = vmax.f32 %v989_v37, %v990_v53  ;;  %v1004_v49 = vrot.slane %v1003_v35, 4  ;;  %v275_v52 = vld [vmem:[%s2540_s9 + $0xe0] sm:$0xff]  ;;  %v277_v53 = vld [vmem:[%s2540_s9 + $0xf0] sm:$0xff] }
  0xd1   : > { %1521 = vrot.lane.b32.xlu1 %v2780_v60, %s2359_s11  ;;  %v965_v62 = vmax.f32 %v963_v47, %v964_v54  ;;  %v971_v63 = vrot.slane %v970_v21, 2  ;;  %v998_v0 = vmax.f32 %v996_v38, %v997_v56  ;;  %v547_v46 = vcombine.high %v545_v31, %v545_v31 }
  0xd2   : > { %1329 = vrot.lane.b32.xlu0 %v2848_v41, %s2353_s23  ;;  %v979_v4 = vmax.f32 %v977_v51, %v978_v57  ;;  %v985_v44 = vrot.slane %v984_v40, 2  ;;  %v992_v7 = vrot.slane %v991_v61, 2  ;;  %v1005_v8 = vmax.f32 %v1003_v35, %v1004_v49 }
  0xd3   : > { %v966_v26 = vrot.slane %v965_v62, 1  ;;  %v972_v9 = vmax.f32 %v970_v21, %v971_v63  ;;  %v999_v12 = vrot.slane %v998_v0, 2  ;;  %v1010_v13 = vsel %vm680_vm1, %v547_v46, -inf }
  0xd4   : > { %v980_v14 = vrot.slane %v979_v4, 1  ;;  %v986_v60 = vmax.f32 %v984_v40, %v985_v44  ;;  %v993_v16 = vmax.f32 %v991_v61, %v992_v7  ;;  %v1006_v34 = vrot.slane %v1005_v8, 2 }
  0xd5   : > { %1375 = vrot.lane.b32.xlu1 %v2791_v42, %s2352_s21  ;;  %v967_v55 = vmax.f32 %v965_v62, %v966_v26  ;;  %v973_v19 = vrot.slane %v972_v9, 1  ;;  %v1000_v20 = vmax.f32 %v998_v0, %v999_v12  ;;  %v1011_v22 = vrot.slane %v1010_v13, 4 }
  0xd6   : > { %1453 = vrot.lane.b32.xlu0 %v2791_v42, %s2357_s28  ;;  %v981_v58 = vmax.f32 %v979_v4, %v980_v14  ;;  %v987_v24 = vrot.slane %v986_v60, 1  ;;  %v994_v25 = vrot.slane %v993_v16, 1  ;;  %v1007_v15 = vmax.f32 %v1005_v8, %v1006_v34 }
  0xd7   : > { %v974_v29 = vmax.f32 %v972_v9, %v973_v19  ;;  %v1001_v31 = vrot.slane %v1000_v20, 1  ;;  %v1012_v50 = vmax.f32 %v1010_v13, %v1011_v22  ;;  %v317_v33 = vsel %vm279_vm0, %v273_v17, -inf }
  0xd8   : > { %v988_v36 = vmax.f32 %v986_v60, %v987_v24  ;;  %v995_v39 = vmax.f32 %v993_v16, %v994_v25  ;;  %v1008_v43 = vrot.slane %v1007_v15, 1  ;;  %v318_v30 = vmax.f32 %v2825_v18, %v317_v33 }
  0xd9   : > { %1475 = vrot.lane.b32.xlu1 %v2727_v59, %s2355_s13  ;;  %v1002_v37 = vmax.f32 %v1000_v20, %v1001_v31  ;;  %v1229_v47 = vsel %vm1193_vm2, %v974_v29, %v967_v55  ;;  %v1013_v48 = vrot.slane %v1012_v50, 2  ;;  %v319_v51 = vsel %vm279_vm0, %v272_v27, -inf }
  0xda   : > { %1377 = vrot.lane.b32.xlu0 %v2851_v45, %s2352_s21  ;;  %v1009_v38 = vmax.f32 %v1007_v15, %v1008_v43  ;;  %v1230_v54 = vsel %vm1195_vm3, %v981_v58, %v1229_v47  ;;  %v320_v21 = vsel %vm279_vm0, %v274_v32, -inf  ;;  %v548_v18 = vcombine.high %v318_v30, %v318_v30 }
  0xdb   : > { %v1231_v56 = vsel %vm1197_vm4, %v988_v36, %v1230_v54  ;;  %v1014_v35 = vmax.f32 %v1012_v50, %v1013_v48  ;;  %v321_v57 = vmax.f32 %v319_v51, %v320_v21  ;;  %v555_v40 = vrot.slane %v318_v30, %v2563_v11 }
  0xdc   : > { %v1232_v61 = vsel %vm1199_vm5, %v995_v39, %v1231_v56  ;;  %v562_v49 = vrot.slane %v548_v18, %v2563_v11  ;;  %v2886_v62 = vsel %vm279_vm0, %v275_v52, -inf  ;;  %v2889_v63 = vsel %vm279_vm0, %v277_v53, -inf }
  0xdd   : > { %1400 = vrot.lane.b32.xlu1 %v2837_v23, %s2354_s12  ;;  %v1233_v0 = vsel %vm1201_vm6, %v1002_v37, %v1232_v61  ;;  %v1015_v46 = vrot.slane %v1014_v35, 1  ;;  %v563_v4 = vcombine.high %v555_v40, %v555_v40  ;;  %v565_v44 = vcombine.high %v321_v57, %v321_v57 }
  0xde   : > { %1477 = vrot.lane.b32.xlu0 %v2837_v23, %s2355_s13  ;;  %v1234_v7 = vsel %vm1203_vm7, %v1009_v38, %v1233_v0  ;;  %v564_v8 = vcombine.high %v562_v49, %v562_v49  ;;  %v572_v26 = vrot.slane %v321_v57, %v2563_v11  ;;  %v1017_v9 = vsel %vm680_vm1, %v555_v40, -inf }
  0xdf   : > { %v2900_v12 = vsel %vm1263_vm8, 0.0, %v1234_v7  ;;  %v1016_v13 = vmax.f32 %v1014_v35, %v1015_v46  ;;  %v579_v14 = vrot.slane %v565_v44, %v2563_v11  ;;  %v1018_v60 = vrot.slane %v1017_v9, 4 }
  0xe0   : > { %v1313_v16 = vrot.slane %v2900_v12, 1  ;;  %v1361_v34 = vrot.slane %v2900_v12, 2  ;;  %v580_v17 = vcombine.high %v572_v26, %v572_v26  ;;  %v1024_v55 = vsel %vm680_vm1, %v563_v4, -inf }
  0xe1   : > { %1499 = vrot.lane.b32.xlu1 %v2786_v5, %s2358_s29  ;;  %v1277_v19 = vsel %vm1263_vm8, %v1016_v13, 0.0  ;;  %v581_v20 = vcombine.high %v579_v14, %v579_v14  ;;  %v1019_v22 = vmax.f32 %v1017_v9, %v1018_v60  ;;  %v1025_v58 = vrot.slane %v1024_v55, 4 }
  0xe2   : > { %1402 = vrot.lane.b32.xlu0 %v2900_v12, %s2354_s12  ;;  %v1314_v24 = vrot.slane %v1277_v19, 1  ;;  %v1362_v25 = vrot.slane %v1277_v19, 2  ;;  %v1031_v15 = vsel %vm680_vm1, %v562_v49, -inf  ;;  %v1038_v27 = vsel %vm680_vm1, %v564_v8, -inf  ;;  %v276_v8 = vld [vmem:[%s2540_s9 + $0xe8] sm:$0xff] }
  0xe3   : > { %v1020_v29 = vrot.slane %v1019_v22, 2  ;;  %v1026_v31 = vmax.f32 %v1024_v55, %v1025_v58  ;;  %v1032_v50 = vrot.slane %v1031_v15, 4  ;;  %v1039_v32 = vrot.slane %v1038_v27, 4 }
  0xe4   : > { %v2914_v5 = vsel %vm1295_vm10, %v1313_v16, %v1314_v24  ;;  %v2917_v33 = vsel %vm1343_vm9, %v1361_v34, %v1362_v25  ;;  %v1045_v36 = vsel %vm680_vm1, %v572_v26, -inf  ;;  %v1052_v39 = vsel %vm680_vm1, %v580_v17, -inf  ;;  %v278_v17 = vld [vmem:[%s2540_s9 + $0xf8] sm:$0xff]  ;;  %s3141_s9 = scalar_lea.hbm %s3268_s2, %s2026_s6 }
  0xe5   : > { %1428 = vrot.lane.b32.xlu1 %v2848_v41, %s2356_s10  ;;  %v1021_v43 = vmax.f32 %v1019_v22, %v1020_v29  ;;  %v1027_v30 = vrot.slane %v1026_v31, 2  ;;  %v1033_v37 = vmax.f32 %v1031_v15, %v1032_v50  ;;  %v1040_v47 = vmax.f32 %v1038_v27, %v1039_v32 }
  0xe6   : > { %1501 = vrot.lane.b32.xlu0 %v2848_v41, %s2358_s29  ;;  %v1046_v48 = vrot.slane %v1045_v36, 4  ;;  %v1053_v51 = vrot.slane %v1052_v39, 4  ;;  %v1059_v52 = vsel %vm680_vm1, %v579_v14, -inf  ;;  %v1066_v53 = vsel %vm680_vm1, %v581_v20, -inf }
  0xe7   : > { %v1022_v38 = vrot.slane %v1021_v43, 1  ;;  %v1028_v54 = vmax.f32 %v1026_v31, %v1027_v30  ;;  %v1034_v21 = vrot.slane %v1033_v37, 2  ;;  %v1041_v18 = vrot.slane %v1040_v47, 2 }
  0xe8   : > { %v1047_v56 = vmax.f32 %v1045_v36, %v1046_v48  ;;  %v1054_v35 = vmax.f32 %v1052_v39, %v1053_v51  ;;  %v1060_v57 = vrot.slane %v1059_v52, 4  ;;  %v1067_v40 = vrot.slane %v1066_v53, 4 }
  0xe9   : > { %1523 = vrot.lane.b32.xlu1 %v2791_v42, %s2359_s11  ;;  %v1023_v61 = vmax.f32 %v1021_v43, %v1022_v38  ;;  %v1029_v41 = vrot.slane %v1028_v54, 1  ;;  %v1035_v49 = vmax.f32 %v1033_v37, %v1034_v21  ;;  %v1042_v0 = vmax.f32 %v1040_v47, %v1041_v18 }
  0xea   : > { %1331 = vrot.lane.b32.xlu0 %v2914_v5, %s2353_s23  ;;  %v1048_v46 = vrot.slane %v1047_v56, 2  ;;  %v1055_v4 = vrot.slane %v1054_v35, 2  ;;  %v1061_v44 = vmax.f32 %v1059_v52, %v1060_v57  ;;  %v1068_v7 = vmax.f32 %v1066_v53, %v1067_v40 }
  0xeb   : > { %v1030_v26 = vmax.f32 %v1028_v54, %v1029_v41  ;;  %v1036_v9 = vrot.slane %v1035_v49, 1  ;;  %v1043_v13 = vrot.slane %v1042_v0, 1  ;;  %v324_v14 = vmax.f32 %v2886_v62, %v2889_v63 }
  0xec   : > { %v1049_v42 = vmax.f32 %v1047_v56, %v1048_v46  ;;  %v1056_v60 = vmax.f32 %v1054_v35, %v1055_v4  ;;  %v1062_v16 = vrot.slane %v1061_v44, 2  ;;  %v1069_v34 = vrot.slane %v1068_v7, 2 }
  0xed   : > { %1430 = vrot.lane.b32.xlu1 %v2914_v5, %s2356_s10  ;;  %v1037_v55 = vmax.f32 %v1035_v49, %v1036_v9  ;;  %v1044_v19 = vmax.f32 %v1042_v0, %v1043_v13  ;;  %v1235_v20 = vsel %vm1193_vm2, %v1030_v26, %v1023_v61  ;;  %v325_v22 = vsel %vm279_vm0, %v276_v8, -inf }
  0xee   : > { %1455 = vrot.lane.b32.xlu0 %v2851_v45, %s2357_s28  ;;  %v1050_v58 = vrot.slane %v1049_v42, 1  ;;  %v1057_v24 = vrot.slane %v1056_v60, 1  ;;  %v1063_v62 = vmax.f32 %v1061_v44, %v1062_v16  ;;  %v1070_v63 = vmax.f32 %v1068_v7, %v1069_v34 }
  0xef   : > { %v1236_v25 = vsel %vm1195_vm3, %v1037_v55, %v1235_v20  ;;  %v326_v15 = vsel %vm279_vm0, %v278_v17, -inf  ;;  %v582_v27 = vcombine.high %v324_v14, %v324_v14  ;;  %v589_v29 = vrot.slane %v324_v14, %v2563_v11 }
  0xf0   : > { %v1051_v31 = vmax.f32 %v1049_v42, %v1050_v58  ;;  %v1058_v50 = vmax.f32 %v1056_v60, %v1057_v24  ;;  %v1064_v32 = vrot.slane %v1063_v62, 1  ;;  %v1071_v36 = vrot.slane %v1070_v63, 1 }
  0xf1   : > { %1525 = vrot.lane.b32.xlu1 %v2851_v45, %s2359_s11  ;;  %v1237_v39 = vsel %vm1197_vm4, %v1044_v19, %v1236_v25  ;;  %v327_v43 = vmax.f32 %v325_v22, %v326_v15  ;;  %v596_v30 = vrot.slane %v582_v27, %v2563_v11  ;;  %v597_v37 = vcombine.high %v589_v29, %v589_v29 }
  0xf2   : > { %v1065_v47 = vmax.f32 %v1063_v62, %v1064_v32  ;;  %v1072_v48 = vmax.f32 %v1070_v63, %v1071_v36  ;;  %v1238_v51 = vsel %vm1199_vm5, %v1051_v31, %v1237_v39  ;;  %v1073_v52 = vsel %vm680_vm1, %v589_v29, -inf }
  0xf3   : > { %v1239_v53 = vsel %vm1201_vm6, %v1058_v50, %v1238_v51  ;;  %v598_v38 = vcombine.high %v596_v30, %v596_v30  ;;  %v599_v54 = vcombine.high %v327_v43, %v327_v43  ;;  %v606_v21 = vrot.slane %v327_v43, %v2563_v11 }
  0xf4   : > { %v1240_v45 = vsel %vm1203_vm7, %v1065_v47, %v1239_v53  ;;  %v1278_v18 = vsel %vm1263_vm8, %v1072_v48, 0.0  ;;  %v1074_v56 = vrot.slane %v1073_v52, 4  ;;  %v1080_v35 = vsel %vm680_vm1, %v597_v37, -inf }
  0xf5   : > { %1379 = vrot.lane.b32.xlu1 %v2917_v33, %s2352_s21  ;;  %v2958_v57 = vsel %vm1263_vm8, 0.0, %v1240_v45  ;;  %v1317_v40 = vrot.slane %v1278_v18, 1  ;;  %v1365_v61 = vrot.slane %v1278_v18, 2  ;;  %v613_v41 = vrot.slane %v599_v54, %v2563_v11 }
  0xf6   : > { %v1316_v49 = vrot.slane %v2958_v57, 1  ;;  %v1364_v0 = vrot.slane %v2958_v57, 2  ;;  %v614_v46 = vcombine.high %v606_v21, %v606_v21  ;;  %v1075_v4 = vmax.f32 %v1073_v52, %v1074_v56 }
  0xf7   : > { %v1081_v44 = vrot.slane %v1080_v35, 4  ;;  %v1087_v7 = vsel %vm680_vm1, %v596_v30, -inf  ;;  %v1094_v8 = vsel %vm680_vm1, %v598_v38, -inf  ;;  %v1101_v26 = vsel %vm680_vm1, %v606_v21, -inf }
  0xf8   : > { %v2967_v9 = vsel %vm1295_vm10, %v1316_v49, %v1317_v40  ;;  %v2970_v13 = vsel %vm1343_vm9, %v1364_v0, %v1365_v61  ;;  %v1076_v11 = vrot.slane %v1075_v4, 2  ;;  %v1088_v14 = vrot.slane %v1087_v7, 4 }
  0xf9   : > { %1333 = vrot.lane.b32.xlu0 %v2967_v9, %s2353_s23  ;;  %1479 = vrot.lane.b32.xlu1 %v2900_v12, %s2355_s13  ;;  %v1082_v42 = vmax.f32 %v1080_v35, %v1081_v44  ;;  %v1095_v60 = vrot.slane %v1094_v8, 4  ;;  %v1102_v16 = vrot.slane %v1101_v26, 4  ;;  %v1108_v34 = vsel %vm680_vm1, %v614_v46, -inf  ;;  %s1815_s23 = scalar_lea.sflag [#allocation4], %s2536_s14 }
  0xfa   : > { %v1077_v17 = vmax.f32 %v1075_v4, %v1076_v11  ;;  %v1089_v55 = vmax.f32 %v1087_v7, %v1088_v14  ;;  %v1109_v19 = vrot.slane %v1108_v34, 4  ;;  %v1115_v20 = vsel %vm680_vm1, %v613_v41, -inf  ;;  %v1614_v7 = vld [vmem:[#allocation5] sm:$0xff] }
  0xfb   : > { %v1083_v22 = vrot.slane %v1082_v42, 2  ;;  %v1096_v58 = vmax.f32 %v1094_v8, %v1095_v60  ;;  %v1103_v24 = vmax.f32 %v1101_v26, %v1102_v16  ;;  %v1116_v62 = vrot.slane %v1115_v20, 4  ;;  %v1615_v8 = vld [vmem:[#allocation5 + $0x8] sm:$0xff]  ;;  %v1617_v60 = vld [vmem:[#allocation5 + $0x18] sm:$0xff] }
  0xfc   : > { %v1078_v63 = vrot.slane %v1077_v17, 1  ;;  %v1090_v25 = vrot.slane %v1089_v55, 2  ;;  %v1110_v15 = vmax.f32 %v1108_v34, %v1109_v19  ;;  %v615_v27 = vcombine.high %v613_v41, %v613_v41 }
  0xfd   : > { %1457 = vrot.lane.b32.xlu0 %v2917_v33, %s2357_s28  ;;  %1404 = vrot.lane.b32.xlu1 %v2958_v57, %s2354_s12  ;;  %v1084_v29 = vmax.f32 %v1082_v42, %v1083_v22  ;;  %v1097_v31 = vrot.slane %v1096_v58, 2  ;;  %v1104_v50 = vrot.slane %v1103_v24, 2  ;;  %v1117_v32 = vmax.f32 %v1115_v20, %v1116_v62  ;;  %v1616_v42 = vld [vmem:[#allocation5 + $0x10] sm:$0xff]  ;;  %v1368_v20 = vpop.permute.xlu1 %1367  ;;  %v1320_v22 = vpop.permute.xlu0 %1319 }
  0xfe   : > { %v1079_v36 = vmax.f32 %v1077_v17, %v1078_v63  ;;  %v1091_v39 = vmax.f32 %v1089_v55, %v1090_v25  ;;  %v1111_v43 = vrot.slane %v1110_v15, 2  ;;  %v1122_v30 = vsel %vm680_vm1, %v615_v27, -inf }
  0xff   : > { %v1085_v37 = vrot.slane %v1084_v29, 1  ;;  %v1098_v47 = vmax.f32 %v1096_v58, %v1097_v31  ;;  %v1105_v48 = vmax.f32 %v1103_v24, %v1104_v50  ;;  %v1118_v51 = vrot.slane %v1117_v32, 2 }
 0x100   : > { %v1092_v52 = vrot.slane %v1091_v39, 1  ;;  %v1112_v53 = vmax.f32 %v1110_v15, %v1111_v43  ;;  %v1123_v38 = vrot.slane %v1122_v30, 4  ;;  %v2062_v34 = vpack.c.bf16 %v1615_v8, %v1614_v7  ;;  %v1618_v15 = vld [vmem:[#allocation5 + $0x20] sm:$0xf] }
 0x101   : > { %1381 = vrot.lane.b32.xlu0 %v2970_v13, %s2352_s21  ;;  %1503 = vrot.lane.b32.xlu1 %v2914_v5, %s2358_s29  ;;  %v1086_v54 = vmax.f32 %v1084_v29, %v1085_v37  ;;  %v1099_v21 = vrot.slane %v1098_v47, 1  ;;  %v1106_v45 = vrot.slane %v1105_v48, 1  ;;  %v1119_v18 = vmax.f32 %v1117_v32, %v1118_v51  ;;  %v1395_v50 = vpop.permute.xlu1 %1394  ;;  %v1393_v32 = vpop.permute.xlu0 %1392 }
 0x102   : > { %v1093_v56 = vmax.f32 %v1091_v39, %v1092_v52  ;;  %v1113_v35 = vrot.slane %v1112_v53, 1  ;;  %v1124_v40 = vmax.f32 %v1122_v30, %v1123_v38  ;;  %2063 = vmatprep.subr.bf16.mxu0 %v2062_v34  ;;  %v2066_v58 = vpack.c.bf16 %v1617_v60, %v1616_v42  ;;  %2070 = vmatprep.subr.bf16.mxu1 %v2062_v34 }
 0x103   : > { %v1100_v61 = vmax.f32 %v1098_v47, %v1099_v21  ;;  %v1107_v41 = vmax.f32 %v1105_v48, %v1106_v45  ;;  %v1120_v49 = vrot.slane %v1119_v18, 1  ;;  %v1241_v0 = vsel %vm1193_vm2, %v1086_v54, %v1079_v36  ;;  %2065 = vmatpush3.bf16.msra.mxu0 %v2062_v34  ;;  %2073 = vmatpush3.bf16.msra.mxu1 %v2062_v34 }
 0x104   : > { %v1114_v46 = vmax.f32 %v1112_v53, %v1113_v35  ;;  %v1242_v4 = vsel %vm1195_vm3, %v1093_v56, %v1241_v0  ;;  %v1125_v44 = vrot.slane %v1124_v40, 2  ;;  %2067 = vmatprep.subr.bf16.mxu0 %v2066_v58  ;;  %vm1644_vm11 = vcmask 1043456   ;;  %2071 = vmatprep.subr.bf16.mxu1 %v2066_v58 }
 0x105   : > { %1481 = vrot.lane.b32.xlu0 %v2958_v57, %s2355_s13  ;;  %1432 = vrot.lane.b32.xlu1 %v2967_v9, %s2356_s10  ;;  %v1121_v5 = vmax.f32 %v1119_v18, %v1120_v49  ;;  %v1243_v26 = vsel %vm1197_vm4, %v1100_v61, %v1242_v4  ;;  %vm1551_vm12 = vcmask 64512   ;;  %v1543_v53 = vsel %vm279_vm0, 0.0, %v1320_v22 }
 0x106   : > { %v1244_v11 = vsel %vm1199_vm5, %v1107_v41, %v1243_v26  ;;  %v1126_v14 = vmax.f32 %v1124_v40, %v1125_v44  ;;  %vm1560_vm13 = vcmask 97280   ;;  %vm1569_vm14 = vcmask 130048  }
 0x107   : > { %v1245_v16 = vsel %vm1201_vm6, %v1114_v46, %v1244_v11  ;;  %2069 = vmatpush3.bf16.msra.mxu0 %v2066_v58  ;;  %2074 = vmatpush3.bf16.msra.mxu1 %v2066_v58  ;;  %vm1578_vm15 = vcmask 162816   ;;  %vm1587_vm1 = vcmask 195584   ;;  %vm1596_vm2 = vcmask 228352  }
 0x108   : > { %v1246_v17 = vsel %vm1203_vm7, %v1121_v5, %v1245_v16  ;;  %v1127_v55 = vrot.slane %v1126_v14, 1  ;;  %2048 = vmatprep.subr.msk.mxu0 %vm1644_vm11, %v1618_v15  ;;  %2072 = vmatprep.subr.msk.mxu1 %vm1644_vm11, %v1618_v15  ;;  %v1474_v36 = vpop.permute.xlu0 %1473  ;;  %vm1605_vm3 = vcmask 261120   ;;  %vm1619_vm4 = vcmask 293888  }
 0x109   : > { %v1271_v19 = vsel %vm1263_vm8, 0.0, %v1246_v17  ;;  %1527 = vrot.lane.b32.xlu1 %v2917_v33, %s2359_s11 }
 0x10a   : > { %1406 = vrot.lane.b32.xlu0 %v1271_v19, %s2354_s12  ;;  %v1128_v24 = vmax.f32 %v1126_v14, %v1127_v55  ;;  %v1417_v62 = vrot.slane %v1271_v19, 1  ;;  %v1444_v63 = vrot.slane %v1271_v19, 2  ;;  %s2214_s12 = scalar_lea.vmem %s3136_s24, 1024 }
 0x10b   : > { %2049 = vmatpush3.msk.msra.mxu0 %vm1644_vm11, %v1618_v15  ;;  %2075 = vmatpush3.msk.msra.mxu1 %vm1644_vm11, %v1618_v15  ;;  %p2215_p4 = scmp.ne.s32.totalorder %s3136_s24, %s2214_s12 }
 0x10c   : > { %v1279_v25 = vsel %vm1263_vm8, %v1128_v24, 0.0 }
 0x10d   : > { %1459 = vrot.lane.b32.xlu1 %v2970_v13, %s2357_s28  ;;  %v1418_v33 = vrot.slane %v1279_v25, 1  ;;  %v1445_v27 = vrot.slane %v1279_v25, 2  ;;  %p2216_p6 = pnand %p2215_p4, %p2485_p12 }
 0x10e   : > { %1505 = vrot.lane.b32.xlu0 %v2967_v9, %s2358_s29  ;;  %v1472_v9 = vpop.permute.xlu1 %1471 }
 0x10f   : > { %v1419_v29 = vsel %vm1295_vm10, %v1417_v62, %v1418_v33  ;;  %v1446_v31 = vsel %vm1343_vm9, %v1444_v63, %v1445_v27  ;;  %p2217_p8 = pneg %p2216_p6 }
 0x111   : > { %1461 = vrot.lane.b32.xlu1 %v1446_v31, %s2357_s28 }
 0x112   : > { %1434 = vrot.lane.b32.xlu0 %v1419_v29, %s2356_s10  ;;  %v1397_v39 = vpop.permute.xlu1 %1396 }
 0x115   : > { %1485 = vrot.lane.b32.xlu1 %v2350_v1, %s2355_s13 }
 0x116   : > { %1529 = vrot.lane.b32.xlu0 %v2970_v13, %s2359_s11 }
 0x119   : > { %1509 = vrot.lane.b32.xlu1 %v2554_v3, %s2358_s29 }
 0x11a   : > { %1483 = vrot.lane.b32.xlu0 %v1271_v19, %s2355_s13  ;;  %s2360_s13 = smov [#allocation7]  }
 0x11b   : > { %v3021_v43 = vpop.permute.xlu0 %1398  ;;  %s2218_s10 = sshll.u32 %s2360_s13, 4  ;;  %s2219_s10 = int_to_ptr.vmem [resolvable:$false] %s2218_s10 }
 0x11c   : > { %s2220_s28 = scalar_lea.vmem %s2219_s10, 2048  ;;  %p2221_p10 = scmp.lt.s32.totalorder %s3136_s24, %s2219_s10 }
 0x11d   : > { %1533 = vrot.lane.b32.xlu1 %v2551_v2, %s2359_s11  ;;  %v1552_v2 = vsel %vm1551_vm12, %v1543_v53, %v1368_v20  ;;  %p2222_p13 = scmp.lt.s32.totalorder %s2220_s28, %s2214_s12 }
 0x11e   : > { %1507 = vrot.lane.b32.xlu0 %v1419_v29, %s2358_s29  ;;  %v1561_v21 = vsel %vm1560_vm13, %v1552_v2, %v1393_v32 }
 0x11f   : > { %p2223_p3 = por %p2222_p13, %p2221_p10 }
 0x120   : > { %v1322_v30 = vpop.permute.xlu0 %1321  ;;  %v1370_v1 = vpop.permute.xlu1 %1369 }
 0x121   : > { %v1544_v18 = vsel %vm279_vm0, %v2659_v10, %v1322_v30  ;;  %p2224_p7 = pnand %p2223_p3, %p2217_p8 }
 0x122   : > { %1531 = vrot.lane.b32.xlu0 %v1446_v31, %s2359_s11  ;;  %v1553_v61 = vsel %vm1551_vm12, %v1544_v18, %v1370_v1 }
 0x123   : > { %v1562_v10 = vsel %vm1560_vm13, %v1553_v61, %v1395_v50 }
 0x124   : > { %v1421_v37 = vpop.permute.xlu0 %1420 }
 0x125   : > { %v1570_v45 = vsel %vm1569_vm14, %v1561_v21, %v1421_v37 }
 0x127   : > { %v1324_v47 = vpop.permute.xlu1 %1323 }
 0x128   : > { %v1423_v13 = vpop.permute.xlu0 %1422  ;;  %v1545_v22 = vsel %vm279_vm0, %v2628_v6, %v1324_v47 }
 0x129   : > { %v1571_v44 = vsel %vm1569_vm14, %v1562_v10, %v1423_v13 }
 0x12b   : > { %v1448_v48 = vpop.permute.xlu1 %1447 }
 0x12c   : > { %v1326_v51 = vpop.permute.xlu0 %1325  ;;  %v1579_v56 = vsel %vm1578_vm15, %v1570_v45, %v1448_v48 }
 0x12d   : > { %v1588_v41 = vsel %vm1587_vm1, %v1579_v56, %v1472_v9  ;;  %v1546_v31 = vsel %vm279_vm0, %v2690_v28, %v1326_v51 }
 0x12f   : > { %v1372_v3 = vpop.permute.xlu1 %1371 }
 0x130   : > { %v1450_v52 = vpop.permute.xlu0 %1449  ;;  %v1554_v24 = vsel %vm1551_vm12, %v1545_v22, %v1372_v3 }
 0x131   : > { %v1580_v7 = vsel %vm1578_vm15, %v1571_v44, %v1450_v52  ;;  %v1563_v63 = vsel %vm1560_vm13, %v1554_v24, %v1397_v39 }
 0x132   : > { %v1589_v26 = vsel %vm1587_vm1, %v1580_v7, %v1474_v36 }
 0x133   : > { %v1496_v38 = vpop.permute.xlu1 %1495 }
 0x134   : > { %v1374_v54 = vpop.permute.xlu0 %1373  ;;  %v1597_v49 = vsel %vm1596_vm2, %v1588_v41, %v1496_v38 }
 0x135   : > { %v1555_v32 = vsel %vm1551_vm12, %v1546_v31, %v1374_v54 }
 0x136   : > { %v1564_v36 = vsel %vm1560_vm13, %v1555_v32, %v3021_v43 }
 0x137   : > { %v1425_v35 = vpop.permute.xlu1 %1424 }
 0x138   : > { %v1498_v40 = vpop.permute.xlu0 %1497  ;;  %v1572_v15 = vsel %vm1569_vm14, %v1563_v63, %v1425_v35 }
 0x139   : > { %v1598_v11 = vsel %vm1596_vm2, %v1589_v26, %v1498_v40 }
 0x13b   : > { %v1520_v0 = vpop.permute.xlu1 %1519 }
 0x13c   : > { %v1606_v46 = vsel %vm1605_vm3, %v1597_v49, %v1520_v0  ;;  %v1328_v4 = vpop.permute.xlu0 %1327 }
 0x13d   : > { %2050 = vmatprep.mubr.msk.f32.mxu0 %vm1619_vm4, %v1606_v46  ;;  %v1547_v21 = vsel %vm279_vm0, %v2727_v59, %v1328_v4 }
 0x13f   : > { %v1427_v8 = vpop.permute.xlu1 %1426 }
 0x140   : > { %v1452_v5 = vpop.permute.xlu0 %1451  ;;  %v1573_v1 = vsel %vm1569_vm14, %v1564_v36, %v1427_v8 }
 0x141   : > { %v1581_v33 = vsel %vm1578_vm15, %v1572_v15, %v1452_v5 }
 0x143   : > { %v1522_v14 = vpop.permute.xlu1 %1521 }
 0x144   : > { %v1607_v42 = vsel %vm1605_vm3, %v1598_v11, %v1522_v14  ;;  %v1330_v60 = vpop.permute.xlu0 %1329 }
 0x145   : > { %2051 = vmatmul.mubr.msk.f32.vlgmr.msra.gmra.mrb[0].mxu0 %vm1619_vm4, %v1607_v42  ;;  %v1548_v44 = vsel %vm279_vm0, %v2837_v23, %v1330_v60 }
 0x147   : > { %v1376_v16 = vpop.permute.xlu1 %1375 }
 0x148   : > { %v1454_v34 = vpop.permute.xlu0 %1453  ;;  %v1556_v45 = vsel %vm1551_vm12, %v1547_v21, %v1376_v16 }
 0x149   : > { %v1582_v37 = vsel %vm1578_vm15, %v1573_v1, %v1454_v34 }
 0x14b   : > { %v1476_v17 = vpop.permute.xlu1 %1475 }
 0x14c   : > { %v1378_v55 = vpop.permute.xlu0 %1377  ;;  %v1590_v29 = vsel %vm1587_vm1, %v1581_v33, %v1476_v17 }
 0x14d   : > { %v1557_v7 = vsel %vm1551_vm12, %v1548_v44, %v1378_v55 }
 0x14f   : > { %v1401_v19 = vpop.permute.xlu1 %1400 }
 0x150   : > { %v1478_v20 = vpop.permute.xlu0 %1477  ;;  %v1565_v18 = vsel %vm1560_vm13, %v1556_v45, %v1401_v19 }
 0x151   : > { %v1591_v28 = vsel %vm1587_vm1, %v1582_v37, %v1478_v20 }
 0x153   : > { %v1500_v58 = vpop.permute.xlu1 %1499 }
 0x154   : > { %v1403_v62 = vpop.permute.xlu0 %1402  ;;  %v1599_v50 = vsel %vm1596_vm2, %v1590_v29, %v1500_v58 }
 0x155   : > { %v1566_v5 = vsel %vm1560_vm13, %v1557_v7, %v1403_v62 }
 0x157   : > { %v1429_v25 = vpop.permute.xlu1 %1428 }
 0x158   : > { %v1502_v27 = vpop.permute.xlu0 %1501  ;;  %v1574_v40 = vsel %vm1569_vm14, %v1565_v18, %v1429_v25 }
 0x159   : > { %v1600_v47 = vsel %vm1596_vm2, %v1591_v28, %v1502_v27 }
 0x15b   : > { %v1524_v6 = vpop.permute.xlu1 %1523 }
 0x15c   : > { %v1608_v9 = vsel %vm1605_vm3, %v1599_v50, %v1524_v6  ;;  %v1332_v30 = vpop.permute.xlu0 %1331 }
 0x15d   : > { %2053 = vmatprep.mubr.msk.f32.mxu0 %vm1619_vm4, %v1608_v9  ;;  %v1549_v20 = vsel %vm279_vm0, %v2900_v12, %v1332_v30 }
 0x15f   : > { %v1431_v39 = vpop.permute.xlu1 %1430 }
 0x160   : > { %v1456_v51 = vpop.permute.xlu0 %1455  ;;  %v1575_v11 = vsel %vm1569_vm14, %v1566_v5, %v1431_v39 }
 0x161   : > { %v1583_v61 = vsel %vm1578_vm15, %v1574_v40, %v1456_v51 }
 0x163   : > { %v1526_v13 = vpop.permute.xlu1 %1525 }
 0x164   : > { %v1609_v48 = vsel %vm1605_vm3, %v1600_v47, %v1526_v13 }
 0x165   : > { %2054 = vmatmul.mubr.msk.f32.gmra.mrb[2].mxu0 %vm1619_vm4, %v1609_v48 }
 0x167   : > { %v1380_v3 = vpop.permute.xlu1 %1379 }
 0x168   : > { %v1558_v58 = vsel %vm1551_vm12, %v1549_v20, %v1380_v3 }
 0x16b   : > { %v1334_v52 = vpop.permute.xlu0 %1333  ;;  %v1480_v53 = vpop.permute.xlu1 %1479 }
 0x16c   : > { %v1592_v41 = vsel %vm1587_vm1, %v1583_v61, %v1480_v53  ;;  %v1550_v55 = vsel %vm279_vm0, %v2958_v57, %v1334_v52 }
 0x16f   : > { %v1458_v43 = vpop.permute.xlu0 %1457  ;;  %v1405_v38 = vpop.permute.xlu1 %1404 }
 0x170   : > { %v1584_v14 = vsel %vm1578_vm15, %v1575_v11, %v1458_v43  ;;  %v1567_v62 = vsel %vm1560_vm13, %v1558_v58, %v1405_v38 }
 0x173   : > { %v1382_v2 = vpop.permute.xlu0 %1381  ;;  %v1504_v54 = vpop.permute.xlu1 %1503 }
 0x174   : > { %v1601_v49 = vsel %vm1596_vm2, %v1592_v41, %v1504_v54  ;;  %v1559_v22 = vsel %vm1551_vm12, %v1550_v55, %v1382_v2 }
 0x177   : > { %v1482_v56 = vpop.permute.xlu0 %1481  ;;  %v1433_v35 = vpop.permute.xlu1 %1432 }
 0x178   : > { %v1593_v42 = vsel %vm1587_vm1, %v1584_v14, %v1482_v56  ;;  %v1576_v15 = vsel %vm1569_vm14, %v1567_v62, %v1433_v35 }
 0x17b   : > { %v1528_v0 = vpop.permute.xlu1 %1527 }
 0x17c   : > { %v1407_v46 = vpop.permute.xlu0 %1406  ;;  %v1610_v10 = vsel %vm1605_vm3, %v1601_v49, %v1528_v0 }
 0x17d   : > { %2056 = vmatprep.mubr.msk.f32.mxu1 %vm1619_vm4, %v1610_v10  ;;  %v1568_v24 = vsel %vm1560_vm13, %v1559_v22, %v1407_v46 }
 0x17f   : > { %v1460_v59 = vpop.permute.xlu1 %1459 }
 0x180   : > { %v1506_v4 = vpop.permute.xlu0 %1505  ;;  %v1585_v27 = vsel %vm1578_vm15, %v1576_v15, %v1460_v59 }
 0x181   : > { %v1602_v34 = vsel %vm1596_vm2, %v1593_v42, %v1506_v4 }
 0x183   : > { %v1462_v8 = vpop.permute.xlu1 %1461 }
 0x184   : > { %v1435_v26 = vpop.permute.xlu0 %1434 }
 0x185   : > { %v1577_v63 = vsel %vm1569_vm14, %v1568_v24, %v1435_v26 }
 0x186   : > { %v1586_v33 = vsel %vm1578_vm15, %v1577_v63, %v1462_v8 }
 0x187   : > { %v1486_v16 = vpop.permute.xlu1 %1485 }
 0x188   : > { %v1530_v17 = vpop.permute.xlu0 %1529  ;;  %v1595_v12 = vsel %vm1587_vm1, %v1586_v33, %v1486_v16 }
 0x189   : > { %v1611_v19 = vsel %vm1605_vm3, %v1602_v34, %v1530_v17 }
 0x18a   : > { %2057 = vmatmul.mubr.msk.f32.vlgmr.msra.gmra.mrb[0].mxu1 %vm1619_vm4, %v1611_v19 }
 0x18b   : > { %v1510_v23 = vpop.permute.xlu1 %1509 }
 0x18c   : > { %v1484_v60 = vpop.permute.xlu0 %1483  ;;  %v1604_v31 = vsel %vm1596_vm2, %v1595_v12, %v1510_v23 }
 0x18d   : > { %v1594_v29 = vsel %vm1587_vm1, %v1585_v27, %v1484_v60 }
 0x18f   : > { %v1534_v57 = vpop.permute.xlu1 %1533 }
 0x190   : > { %v1508_v25 = vpop.permute.xlu0 %1507  ;;  %v1613_v6 = vsel %vm1605_vm3, %v1604_v31, %v1534_v57 }
 0x191   : > { %v1603_v50 = vsel %vm1596_vm2, %v1594_v29, %v1508_v25 }
 0x194   : > { %v1532_v32 = vpop.permute.xlu0 %1531 }
 0x195   : > { %v1612_v9 = vsel %vm1605_vm3, %v1603_v50, %v1532_v32 }
 0x196   : > { %2059 = vmatprep.mubr.msk.f32.mxu1 %vm1619_vm4, %v1612_v9 }
 0x197   : > { %2060 = vmatmul.mubr.msk.f32.gmra.mrb[2].mxu1 %vm1619_vm4, %v1613_v6 }
 0x218   : > { %v2052_v36 = vpop.f32.mrb[0].mxu0 }
 0x219   : > { %1754 = vst.msk [vmem:[%s3108_s25 + $0x8] sm:$0xff] %vm1551_vm12, %v2052_v36  ;;  %v1762_v39 = vsel %vm1551_vm12, %v2052_v36, 0.0  ;;  %v1785_v30 = vmul.f32 %v2052_v36, %v2052_v36  ;;  %v1714_v1 = vpop.f32.mrb[1].mxu0 }
 0x21a   : > { %1753 = vst.msk [vmem:[%s3108_s25] sm:$0xff] %vm1551_vm12, %v1714_v1  ;;  %v1761_v37 = vsel %vm1551_vm12, %v1714_v1, 0.0  ;;  %v1784_v28 = vmul.f32 %v1714_v1, %v1714_v1 }
 0x21b   : > { %v1793_v47 = vsel %vm1551_vm12, %v1785_v30, 0.0  ;;  %v1763_v13 = vadd.f32 %v1762_v39, %v1761_v37 }
 0x21c   : > { %v1792_v48 = vsel %vm1551_vm12, %v1784_v28, 0.0 }
 0x21d   : > { %v1794_v51 = vadd.f32 %v1793_v47, %v1792_v48 }
 0x238   : > { %v2055_v3 = vpop.f32.mrb[2].mxu0 }
 0x239   : > { %1756 = vst.msk [vmem:[%s3108_s25 + $0x18] sm:$0xff] %vm1551_vm12, %v2055_v3  ;;  %v1724_v52 = vpop.f32.mrb[3].mxu0  ;;  %v1787_v53 = vmul.f32 %v2055_v3, %v2055_v3  ;;  %v1766_v54 = vsel %vm1551_vm12, %v2055_v3, 0.0 }
 0x23a   : > { %1755 = vst.msk [vmem:[%s3108_s25 + $0x10] sm:$0xff] %vm1551_vm12, %v1724_v52  ;;  %v1764_v43 = vsel %vm1551_vm12, %v1724_v52, 0.0  ;;  %v1786_v38 = vmul.f32 %v1724_v52, %v1724_v52 }
 0x23b   : > { %v1765_v2 = vadd.f32 %v1764_v43, %v1763_v13  ;;  %v1797_v56 = vsel %vm1551_vm12, %v1787_v53, 0.0 }
 0x23c   : > { %v1795_v21 = vsel %vm1551_vm12, %v1786_v38, 0.0 }
 0x23d   : > { %v1767_v45 = vadd.f32 %v1766_v54, %v1765_v2  ;;  %v1796_v18 = vadd.f32 %v1795_v21, %v1794_v51 }
 0x23f   : > { %v1798_v35 = vadd.f32 %v1797_v56, %v1796_v18 }
 0x25d   : > { %v2058_v40 = vpop.f32.mrb[0].mxu1 }
 0x25e   : > { %1758 = vst.msk [vmem:[%s3108_s25 + $0x28] sm:$0xff] %vm1551_vm12, %v2058_v40  ;;  %v1734_v61 = vpop.f32.mrb[1].mxu1  ;;  %v1789_v41 = vmul.f32 %v2058_v40, %v2058_v40  ;;  %v1770_v10 = vsel %vm1551_vm12, %v2058_v40, 0.0 }
 0x25f   : > { %1757 = vst.msk [vmem:[%s3108_s25 + $0x20] sm:$0xff] %vm1551_vm12, %v1734_v61  ;;  %v1768_v49 = vsel %vm1551_vm12, %v1734_v61, 0.0  ;;  %v1788_v0 = vmul.f32 %v1734_v61, %v1734_v61 }
 0x260   : > { %v1769_v46 = vadd.f32 %v1768_v49, %v1767_v45  ;;  %v1801_v7 = vsel %vm1551_vm12, %v1789_v41, 0.0 }
 0x261   : > { %v1799_v59 = vsel %vm1551_vm12, %v1788_v0, 0.0 }
 0x262   : > { %v1800_v4 = vadd.f32 %v1799_v59, %v1798_v35  ;;  %v1771_v44 = vadd.f32 %v1770_v10, %v1769_v46 }
 0x264   : > { %v1802_v8 = vadd.f32 %v1801_v7, %v1800_v4 }
 0x26a   : > { %v2061_v5 = vpop.f32.mrb[2].mxu1 }
 0x26b   : > { %1760 = vst.msk [vmem:[%s3108_s25 + $0x38] sm:$0xff] %vm1551_vm12, %v2061_v5  ;;  %v1744_v26 = vpop.f32.mrb[3].mxu1  ;;  %v1791_v11 = vmul.f32 %v2061_v5, %v2061_v5 }
 0x26c   : > { %1759 = vst.msk [vmem:[%s3108_s25 + $0x30] sm:$0xff] %vm1551_vm12, %v1744_v26  ;;  %v1772_v14 = vsel %vm1551_vm12, %v1744_v26, 0.0  ;;  %v1790_v42 = vmul.f32 %v1744_v26, %v1744_v26 }
 0x26d   : > { %v1773_v16 = vadd.f32 %v1772_v14, %v1771_v44 }
 0x26e   : > { %2227 = shalt.err (!%p2224_p7)
}
 0x26f   : > { %s2228_s29 = scalar_lea.hbm %s3141_s9, 1024  ;;  %s2232_s25 = scalar_lea.hbm %s3268_s2, 2048 }
 0x270   : > { %p2229_p9 = scmp.ne.s32.totalorder %s3141_s9, %s2228_s29  ;;  %p2233_p5 = scmp.lt.u32.totalorder %s3141_s9, %s3268_s2 }
 0x271   : > { %p2234_p11 = scmp.lt.u32.totalorder %s2232_s25, %s2228_s29  ;;  %p2236_p4 = scmp.lt.u32.totalorder %s2228_s29, %s3141_s9 }
 0x272   : > { %p2230_p1 = pnand %p2229_p9, %p2485_p12 }
 0x273   : > { %p2235_p2 = por %p2234_p11, %p2233_p5 }
 0x274   : > { %p2231_p0 = pneg %p2230_p1 }
 0x275   : > { %p2237_p6 = por %p2236_p4, %p2235_p2 }
 0x277   : > { %p2238_p8 = pnand %p2237_p6, %p2231_p0 }
 0x279   : > { %2241 = shalt.err (!%p2238_p8)
}
 0x27a   : > { %s2361_s8 = smov 128   ;;  %v1774_v34 = vsel %vm1551_vm12, %v2061_v5, 0.0  ;;  %v1803_v17 = vsel %vm1551_vm12, %v1790_v42, 0.0  ;;  %v1805_v60 = vsel %vm1551_vm12, %v1791_v11, 0.0  ;;  %vm1782_vm0 = vcmask 57344   ;;  %s246_s12 = scalar_lea.vmem [#allocation10], %s2536_s14 }
 0x27b   : > { %2082 = dma.vmem_to_hbm [thread:$0]  (%p2485_p12), %s3136_s24, 1024, %s3141_s9, %s1815_s23, %s2361_s8, %s2361_s8, %s2352_s21   ;;  %v1775_v19 = vadd.f32 %v1774_v34, %v1773_v16  ;;  %v1804_v23 = vadd.f32 %v1803_v17, %v1802_v8 }
 0x27c   : > { %s1819_s21 = sand.u32 1, %s2410_s19   ;;  %s2021_s24 = sshll.u32 %s2410_s19, 4 }
 0x27d   : > { %v1776_v55 = vrot.slane %v1775_v19, 4  ;;  %v1806_v20 = vadd.f32 %v1805_v60, %v1804_v23  ;;  %s240_s9 = scalar_lea.vmem [#allocation8], %s2536_s14  ;;  %s1865_s13 = sshll.u32 %s246_s12, 4  ;;  %s3195_s13 = int_to_ptr.vmem [resolvable:$true] %s1865_s13 }
 0x27e   : > { %s1852_s23 = sshll.u32 %s240_s9, 4  ;;  %s3185_s29 = scalar_lea.hbm %s3269_s3, %s2021_s24  ;;  %s3187_s23 = int_to_ptr.vmem [resolvable:$true] %s1852_s23 }
 0x27f   : > { %v1777_v22 = vadd.f32 %v1776_v55, %v1775_v19  ;;  %v1807_v58 = vrot.slane %v1806_v20, 4  ;;  %s3193_s26 = scalar_lea.hbm %s3270_s4, %s2021_s24  ;;  %s3197_s25 = scalar_lea.sflag [#allocation9], %s1819_s21 }
 0x280   : > { %s2242_s6 = scalar_lea.vmem %s3187_s23, 16  ;;  %s2362_s7 = smov [#allocation8]  }
 0x281   : > { %v1778_v24 = vrot.slane %v1777_v22, 2  ;;  %v1808_v62 = vadd.f32 %v1807_v58, %v1806_v20  ;;  %p2243_p10 = scmp.ne.s32.totalorder %s3187_s23, %s2242_s6  ;;  %s2246_s8 = sshll.u32 %s2362_s7, 4  ;;  %s2247_s8 = int_to_ptr.vmem [resolvable:$false] %s2246_s8 }
 0x282   : > { %s2248_s10 = scalar_lea.vmem %s2247_s8, 32  ;;  %p2249_p7 = scmp.lt.s32.totalorder %s3187_s23, %s2247_s8 }
 0x283   : > { %v1779_v63 = vadd.f32 %v1778_v24, %v1777_v22  ;;  %v1809_v25 = vrot.slane %v1808_v62, 2  ;;  %p2244_p13 = pnand %p2243_p10, %p2485_p12  ;;  %p2250_p9 = scmp.lt.s32.totalorder %s2248_s10, %s2242_s6 }
 0x285   : > { %v1780_v15 = vrot.slane %v1779_v63, 1  ;;  %v1810_v33 = vadd.f32 %v1809_v25, %v1808_v62  ;;  %p2245_p3 = pneg %p2244_p13  ;;  %p2251_p1 = por %p2250_p9, %p2249_p7 }
 0x287   : > { %v1781_v57 = vadd.f32 %v1780_v15, %v1779_v63  ;;  %v1811_v27 = vrot.slane %v1810_v33, 1  ;;  %p2252_p0 = pnand %p2251_p1, %p2245_p3 }
 0x289   : > { %v1812_v12 = vadd.f32 %v1811_v27, %v1810_v33  ;;  %1783 = vst.msk [vmem:[%s240_s9] sm:$0x1] %vm1782_vm0, %v1781_v57 }
 0x28a   : > { %2255 = shalt.err (!%p2252_p0)
}
 0x28b   : > { %s2256_s21 = scalar_lea.hbm %s3185_s29, 16  ;;  %s2260_s28 = scalar_lea.hbm %s3269_s3, 32 }
 0x28c   : > { %p2257_p5 = scmp.ne.s32.totalorder %s3185_s29, %s2256_s21  ;;  %p2261_p4 = scmp.lt.u32.totalorder %s3185_s29, %s3269_s3 }
 0x28d   : > { %p2262_p6 = scmp.lt.u32.totalorder %s2260_s28, %s2256_s21  ;;  %p2264_p10 = scmp.lt.u32.totalorder %s2256_s21, %s3185_s29 }
 0x28e   : > { %p2258_p11 = pnand %p2257_p5, %p2485_p12 }
 0x28f   : > { %p2263_p8 = por %p2262_p6, %p2261_p4 }
 0x290   : > { %p2259_p2 = pneg %p2258_p11 }
 0x291   : > { %p2265_p13 = por %p2264_p10, %p2263_p8 }
 0x293   : > { %p2266_p3 = pnand %p2265_p13, %p2259_p2 }
 0x295   : > { %2269 = shalt.err (!%p2266_p3)
}
 0x296   : > { %2083 = dma.vmem_to_hbm [thread:$0]  (%p2485_p12), %s3187_s23, 16, %s3185_s29, %s3197_s25   ;;  %1813 = vst.msk [vmem:[%s246_s12] sm:$0x1] %vm1782_vm0, %v1812_v12 }
 0x297   : > { %s2270_s6 = scalar_lea.vmem %s3195_s13, 16  ;;  %s2363_s7 = smov [#allocation10]  }
 0x298   : > { %p2271_p7 = scmp.ne.s32.totalorder %s3195_s13, %s2270_s6  ;;  %s2274_s8 = sshll.u32 %s2363_s7, 4  ;;  %s2275_s8 = int_to_ptr.vmem [resolvable:$false] %s2274_s8 }
 0x299   : > { %s2276_s10 = scalar_lea.vmem %s2275_s8, 32  ;;  %p2277_p0 = scmp.lt.s32.totalorder %s3195_s13, %s2275_s8 }
 0x29a   : > { %p2272_p9 = pnand %p2271_p7, %p2485_p12  ;;  %p2278_p5 = scmp.lt.s32.totalorder %s2276_s10, %s2270_s6 }
 0x29c   : > { %p2273_p1 = pneg %p2272_p9  ;;  %p2279_p11 = por %p2278_p5, %p2277_p0 }
 0x29e   : > { %p2280_p2 = pnand %p2279_p11, %p2273_p1 }
 0x2a0   : > { %2283 = shalt.err (!%p2280_p2)
}
 0x2a1   : > { %s2284_s14 = scalar_lea.hbm %s3193_s26, 16  ;;  %s2288_s29 = scalar_lea.hbm %s3270_s4, 32 }
 0x2a2   : > { %p2285_p4 = scmp.ne.s32.totalorder %s3193_s26, %s2284_s14  ;;  %p2289_p10 = scmp.lt.u32.totalorder %s3193_s26, %s3270_s4 }
 0x2a3   : > { %p2290_p13 = scmp.lt.u32.totalorder %s2288_s29, %s2284_s14  ;;  %p2292_p7 = scmp.lt.u32.totalorder %s2284_s14, %s3193_s26 }
 0x2a4   : > { %p2286_p6 = pnand %p2285_p4, %p2485_p12 }
 0x2a5   : > { %p2291_p3 = por %p2290_p13, %p2289_p10 }
 0x2a6   : > { %p2287_p8 = pneg %p2286_p6 }
 0x2a7   : > { %p2293_p9 = por %p2292_p7, %p2291_p3 }
 0x2a9   : > { %p2294_p1 = pnand %p2293_p9, %p2287_p8 }
 0x2ab   : > { %2297 = shalt.err (!%p2294_p1)
}
 0x2ac   : > { %2084 = dma.vmem_to_hbm [thread:$0]  (%p2485_p12), %s3195_s13, 16, %s3193_s26, %s3197_s25  }
 0x2ad PF: > { %s1877_s9 = sand.u32 1, %s2332_s15   ;;  %p3285_p0 = scmp.ne.s32.totalorder %s3275_s22, 0 }
 0x2ae   : > { %p3286_p5 = scmp.ge.s32.totalorder %s2344_s18, 2  ;;  %s1878_s28 = scalar_lea.sflag [#allocation4], %s1877_s9 }
 0x2b0   : > { %p2097_p11 = pnand %p3286_p5, %p3285_p0 }
 0x2b2   : > { %2323 = dma.done.wait (!%p2097_p11), %s1878_s28, 1024  }
 0x2b3   : > { %2325 = vsyncadd (!%p2097_p11), %s1878_s28, 4294966272  ;;  %s1886_s19 = sand.u32 1, %s1998_s20  }
 0x2b4   : > { %s1887_s11 = scalar_lea.sflag [#allocation9], %s1886_s19 }
 0x2b5   : > { %2327 = dma.done.wait (!%p2097_p11), %s1887_s11, 32  }
 0x2b6   : > { %2329 = vsyncadd (!%p2097_p11), %s1887_s11, 4294967264  ;;  %p22_p12 = scmp.ge.s32.totalorder %s2447_s27, 4   ;;  %s3287_s15 = smov %s2336_s16 }
 0x2b7   : > { %s3288_s16 = smov %s2340_s17  ;;  %s3289_s17 = smov %s2481_s30 }
 0x2b8   : > { %s3290_s18 = smov %s2447_s27  ;;  %24 = sbr.rel (!%p22_p12) target bundleno = 8 (0x8), region = 109 }
 0x2bf   :  { %1899 = vsyncpa [#allocation3], 1 }
 0x2c0   :  { %1901 = vsyncpa [#allocation3 + $0x1], 1 }
 0x2c1   :  { %1902 = vsyncpa [#allocation6], 1 }
 0x2c2   :  { %1903 = vsyncpa [#allocation4], 1 }
 0x2c3   :  { %1905 = vsyncpa [#allocation4 + $0x1], 1 }
 0x2c4   :  { %1906 = vsyncpa [#allocation9], 1 }
 0x2c5   :  { %1908 = vsyncpa [#allocation9 + $0x1], 1 }

</bundles_post_ra>
